<compile_context>
chip_gen: v5e
topology: v5e:2x2
jax: 0.10.0
libtpu: 0.0.40
codegen_flags: <defaults>
</compile_context>

<pallas_src>
import jax
import jax.numpy as jnp
import numpy as np
from jax.experimental import pallas as pl
from jax.experimental.pallas import tpu as pltpu

_LANE = 128
_SUBLANE = 8


def _round_up(x, m):
    return (x + m - 1) // m * m


def _vmem_capacity_bytes():
    # Generation-aware VMEM budget (v5e/v6e: 128 MiB, v7x: 64 MiB per TC).
    try:
        return int(pltpu.get_tpu_info().vmem_capacity_bytes)
    except Exception:
        return 64 * 1024 * 1024        # conservative fallback (v7x per-TensorCore)


def _estimate_vmem(tb, thw, c, f, ncp):
    rows = tb * thw
    return (2 * rows * c * 2                 # x tile, double-buffered, bf16
            + rows * f * (4 + 2)             # feat f32 + bf16 copy for pool matmul
            + 2 * tb * rows * 2              # pool matrix, double-buffered, bf16
            + 2 * (c * f + f * ncp) * 2      # stem / classifier weights, bf16
            + 2 * (f + ncp) * 4              # biases, f32
            + tb * f * 4                     # pooled accumulator scratch
            + 2 * tb * ncp * 4)              # output tile


def _pick_thw(hw, tb, c, f, ncp, budget):
    # Largest spatial tile that (a) divides HW, (b) satisfies the (8, 128)
    # sublane rule (multiple of 8, or the full extent), (c) fits the budget.
    cands = sorted((d for d in range(1, hw + 1)
                    if hw % d == 0 and (d % _SUBLANE == 0 or d == hw)),
                   reverse=True)
    for thw in cands:
        if _estimate_vmem(tb, thw, c, f, ncp) <= budget:
            return thw
    return cands[-1]


def _make_kernel(tb, thw, c, f):
    def kernel(x_ref, pool_ref, w_stem_ref, b_stem_ref, w_cls_ref, b_cls_ref,
               o_ref, acc_ref):
        # x_ref:      (TB, THW, C)  bf16  channels-last image tile
        # pool_ref:   (TB, TB*THW)  bf16  block-diagonal 0/1 segment-sum matrix
        # w_stem_ref: (C, F)        bf16  1x1-conv stem weight
        # b_stem_ref: (1, F)        f32
        # w_cls_ref:  (F, NCP)      bf16  classifier weight, 1/HW folded in, lane-padded
        # b_cls_ref:  (1, NCP)      f32
        # o_ref:      (TB, NCP)     f32   lane-dense logits slab
        # acc_ref:    (TB, F)       f32   pooled-sum accumulator (VMEM scratch)
        hw_step = pl.program_id(1)

        @pl.when(hw_step == 0)
        def _init():
            acc_ref[...] = jnp.zeros_like(acc_ref)

        # Stem: one MXU matmul over all pixels in the tile (M = TB*THW).
        # Collapsing (TB, THW, C) -> (TB*THW, C) keeps C on lanes and
        # THW % 8 == 0 on sublanes, so the reshape is layout-preserving.
        x2d = x_ref[...].reshape(tb * thw, c)
        feat = jnp.dot(x2d, w_stem_ref[...],
                       preferred_element_type=jnp.float32)           # (TB*THW, F) f32
        feat = jnp.maximum(feat + b_stem_ref[...], 0.0)              # bias + ReLU (f32 VPU)

        # Segment-sum global pooling as an MXU matmul (1/HW lives in w_cls).
        acc_ref[...] += jnp.dot(pool_ref[...], feat.astype(pool_ref.dtype),
                                preferred_element_type=jnp.float32)  # (TB, F) f32

        @pl.when(hw_step == pl.num_programs(1) - 1)
        def _finalize():
            pooled = acc_ref[...].astype(w_cls_ref.dtype)
            logits = jnp.dot(pooled, w_cls_ref[...],
                             preferred_element_type=jnp.float32) + b_cls_ref[...]
            o_ref[...] = logits.astype(o_ref.dtype)                  # full unmasked vst

    return kernel


def prepare_classifier_params(w_stem, b_stem, w_cls, b_cls, hw):
    """One-time (model-init) weight prep: bf16 casts, class-dim lane padding,
    and folding the 1/HW global-average-pool scale into the classifier weight."""
    c, f = w_stem.shape
    n_class = w_cls.shape[1]
    ncp = max(_LANE, _round_up(n_class, _LANE))
    w_cls_scaled = (w_cls.astype(jnp.float32) / float(hw)).astype(jnp.bfloat16)
    w_cls_p = jnp.zeros((f, ncp), jnp.bfloat16).at[:, :n_class].set(w_cls_scaled)
    b_cls_p = jnp.zeros((1, ncp), jnp.float32).at[:, :n_class].set(
        b_cls.reshape(1, n_class).astype(jnp.float32))
    return dict(
        w_stem=w_stem.astype(jnp.bfloat16),
        b_stem=b_stem.reshape(1, f).astype(jnp.float32),
        w_cls=w_cls_p,
        b_cls=b_cls_p,
        n_class=n_class,
        hw=hw,
    )


def classifier_forward(x_nchw, params, *, batch_tile=8):
    N, C, H, W = x_nchw.shape
    HW = H * W
    assert params["hw"] == HW
    F = params["w_stem"].shape[1]
    NCP = params["w_cls"].shape[1]
    n_class = params["n_class"]

    # Batch tiling: TB multiple of 8 (unmasked sublane stores).  With the
    # default batch_tile=8, any N >= 16 gives NB >= 2 so the "parallel" batch
    # axis can shard across v7x's two TensorCores.
    N8 = _round_up(N, _SUBLANE)
    TB = min(_round_up(batch_tile, _SUBLANE), N8)
    NB = pl.cdiv(N8, TB)
    N_pad = NB * TB

    # Spatial tiling: largest HW tile fitting ~3/4 of this generation's VMEM.
    vmem_cap = _vmem_capacity_bytes()
    budget = (vmem_cap * 3) // 4
    THW = _pick_thw(HW, TB, C, F, NCP, budget)
    NHW = HW // THW
    need = _estimate_vmem(TB, THW, C, F, NCP)
    vmem_limit = int(max(32 * 1024 * 1024, min(budget, 2 * need)))

    # Single fused input producer: NCHW -> channels-last, batch pad, bf16 cast.
    # TODO(synk): accept channels-last (NHWC) input to drop this extra HBM pass;
    # for real stems with tiny C, space-to-depth pack channels so the MXU
    # contraction dim and x's lane dim become a lane multiple.
    x = jnp.transpose(x_nchw, (0, 2, 3, 1)).reshape(N, HW, C)
    if N_pad != N:
        x = jnp.pad(x, ((0, N_pad - N), (0, 0), (0, 0)))
    x = x.astype(jnp.bfloat16)

    # Block-diagonal 0/1 segment-sum matrix (host-side constant, bf16-exact).
    pool_mat = jnp.asarray(
        np.kron(np.eye(TB, dtype=np.float32), np.ones((1, THW), np.float32)),
        dtype=jnp.bfloat16)                                      # (TB, TB*THW)

    kernel = _make_kernel(TB, THW, C, F)
    # NOTE: the weight/bias/pool specs have constant index maps; at realistic
    # F/NCP, pipeline_mode=pl.Buffered(1) on those specs would reclaim their
    # second VMEM buffer (most valuable inside v7x's 64 MiB budget).
    out = pl.pallas_call(
        kernel,
        out_shape=jax.ShapeDtypeStruct((N_pad, NCP), jnp.float32),
        grid_spec=pltpu.PrefetchScalarGridSpec(
            num_scalar_prefetch=0,
            grid=(NB, NHW),                        # reduction (HW) axis last
            in_specs=[
                pl.BlockSpec((TB, THW, C), lambda i, j: (i, j, 0)),
                pl.BlockSpec((TB, TB * THW), lambda i, j: (0, 0)),
                pl.BlockSpec((C, F), lambda i, j: (0, 0)),
                pl.BlockSpec((1, F), lambda i, j: (0, 0)),
                pl.BlockSpec((F, NCP), lambda i, j: (0, 0)),
                pl.BlockSpec((1, NCP), lambda i, j: (0, 0)),
            ],
            out_specs=pl.BlockSpec((TB, NCP), lambda i, j: (i, 0)),
            scratch_shapes=[pltpu.VMEM((TB, F), jnp.float32)],
        ),
        compiler_params=pltpu.CompilerParams(
            dimension_semantics=("parallel", "arbitrary"),
            vmem_limit_bytes=vmem_limit),
    )(x, pool_mat, params["w_stem"], params["b_stem"],
      params["w_cls"], params["b_cls"])

    return out[:N, :n_class]


def reference_forward(x_nchw, w_stem, b_stem, w_cls, b_cls):
    # Pure-JAX reference mirroring the kernel's bf16-operand / f32-accumulate math.
    N, C, H, W = x_nchw.shape
    x = jnp.transpose(x_nchw, (0, 2, 3, 1)).reshape(N, H * W, C).astype(jnp.bfloat16)
    feat = jnp.einsum('nsc,cf->nsf', x, w_stem.astype(jnp.bfloat16),
                      preferred_element_type=jnp.float32)
    feat = jnp.maximum(feat + b_stem.reshape(1, 1, -1).astype(jnp.float32), 0.0)
    pooled = jnp.mean(feat, axis=1)                                   # (N, F) f32
    logits = jnp.dot(pooled.astype(jnp.bfloat16), w_cls.astype(jnp.bfloat16),
                     preferred_element_type=jnp.float32) + b_cls.reshape(1, -1)
    return logits


if __name__ == "__main__":
    # small, deterministic shapes consistent with the forward pass
    N, C, H, W = 2, 4, 16, 16       # input images (NCHW, like PyTorch)
    n_features = 32                  # backbone feature dim
    n_class = 8                      # classifier output classes

    key = jax.random.PRNGKey(0)
    kx, kw1, kb1, kw2, kb2 = jax.random.split(key, 5)

    x = jax.random.normal(kx, (N, C, H, W), dtype=jnp.float32)
    w_stem = jax.random.normal(kw1, (C, n_features), dtype=jnp.float32) * 0.1
    b_stem = jax.random.normal(kb1, (1, n_features), dtype=jnp.float32) * 0.1
    w_cls = jax.random.normal(kw2, (n_features, n_class), dtype=jnp.float32) * 0.1
    b_cls = jax.random.normal(kb2, (1, n_class), dtype=jnp.float32) * 0.1

    params = prepare_classifier_params(w_stem, b_stem, w_cls, b_cls, hw=H * W)
    out = classifier_forward(x, params)
    out = jax.block_until_ready(out)

    ref = reference_forward(x, w_stem, b_stem, w_cls, b_cls)
    assert out.shape == (N, n_class)
    assert jnp.allclose(out, ref, atol=2e-2, rtol=2e-2), "mismatch vs reference"

    print("KERNEL_OK")
</pallas_src>

<mosaic_0001>
module attributes {stable_mosaic.version = 11 : i64} {
  func.func @kernel(%arg0: i32, %arg1: i32, %arg2: memref<8x256x4xbf16, #tpu.memory_space<vmem>>, %arg3: memref<8x2048xbf16, #tpu.memory_space<vmem>>, %arg4: memref<4x32xbf16, #tpu.memory_space<vmem>>, %arg5: memref<1x32xf32, #tpu.memory_space<vmem>>, %arg6: memref<32x128xbf16, #tpu.memory_space<vmem>>, %arg7: memref<1x128xf32, #tpu.memory_space<vmem>>, %arg8: memref<8x128xf32, #tpu.memory_space<vmem>>, %arg9: memref<8x32xf32, #tpu.memory_space<vmem>>) attributes {dimension_semantics = [#tpu.dimension_semantics<parallel>, #tpu.dimension_semantics<arbitrary>], iteration_bounds = array<i64: 1, 1>, scalar_prefetch = 0 : i64, scratch_operands = 1 : i64, tpu.core_type = #tpu.core_type<tc>, window_params = [{transform_indices = @transform_0, window_bounds = array<i64: 8, 256, 4>}, {pipeline_mode = #tpu.pipeline_mode<synchronous>, transform_indices = @transform_1, window_bounds = array<i64: 8, 2048>}, {pipeline_mode = #tpu.pipeline_mode<synchronous>, transform_indices = @transform_2, window_bounds = array<i64: 4, 32>}, {pipeline_mode = #tpu.pipeline_mode<synchronous>, transform_indices = @transform_3, window_bounds = array<i64: 1, 32>}, {pipeline_mode = #tpu.pipeline_mode<synchronous>, transform_indices = @transform_4, window_bounds = array<i64: 32, 128>}, {pipeline_mode = #tpu.pipeline_mode<synchronous>, transform_indices = @transform_5, window_bounds = array<i64: 1, 128>}, {transform_indices = @transform_6, window_bounds = array<i64: 8, 128>}]} {
    %c0_i32 = arith.constant 0 : i32
    %0 = arith.cmpi eq, %arg1, %c0_i32 : i32
    %1 = arith.extui %0 : i1 to i32
    %c0_i32_0 = arith.constant 0 : i32
    %2 = arith.cmpi ne, %1, %c0_i32_0 : i32
    scf.if %2 {
      %cst_17 = arith.constant 0.000000e+00 : f32
      %21 = vector.broadcast %cst_17 : f32 to vector<8x32xf32>
      %c0_18 = arith.constant 0 : index
      %c0_19 = arith.constant 0 : index
      %22 = vector.load %arg9[%c0_18, %c0_19] : memref<8x32xf32, #tpu.memory_space<vmem>>, vector<8x32xf32>
      tpu.vector_store %arg9[%c0_18, %c0_19], %21 {strides = array<i32>} : memref<8x32xf32, #tpu.memory_space<vmem>>, vector<8x32xf32>,
    } else {
    }
    %c0 = arith.constant 0 : index
    %c0_1 = arith.constant 0 : index
    %c0_2 = arith.constant 0 : index
    %3 = vector.load %arg2[%c0, %c0_1, %c0_2] : memref<8x256x4xbf16, #tpu.memory_space<vmem>>, vector<8x256x4xbf16>
    %4 = vector.shape_cast %3 : vector<8x256x4xbf16> to vector<2048x4xbf16>
    %c0_3 = arith.constant 0 : index
    %c0_4 = arith.constant 0 : index
    %5 = vector.load %arg4[%c0_3, %c0_4] : memref<4x32xbf16, #tpu.memory_space<vmem>>, vector<4x32xbf16>
    %cst = arith.constant dense<0.000000e+00> : vector<2048x32xf32>
    %6 = tpu.matmul %4, %5, %cst {dimension_numbers = #tpu.dot_dimension_numbers<[1], [0], [0], [1], [0, 0, 1, 1], [], []>} : vector<2048x4xbf16>, vector<4x32xbf16>, vector<2048x32xf32> -> vector<2048x32xf32>
    %c0_5 = arith.constant 0 : index
    %c0_6 = arith.constant 0 : index
    %7 = vector.load %arg5[%c0_5, %c0_6] : memref<1x32xf32, #tpu.memory_space<vmem>>, vector<1x32xf32>
    %8 = vector.broadcast %7 : vector<1x32xf32> to vector<2048x32xf32>
    %9 = arith.addf %6, %8 : vector<2048x32xf32>
    %cst_7 = arith.constant 0.000000e+00 : f32
    %10 = vector.broadcast %cst_7 : f32 to vector<2048x32xf32>
    %11 = arith.maximumf %9, %10 : vector<2048x32xf32>
    %c0_8 = arith.constant 0 : index
    %c0_9 = arith.constant 0 : index
    %12 = vector.load %arg9[%c0_8, %c0_9] : memref<8x32xf32, #tpu.memory_space<vmem>>, vector<8x32xf32>
    %c0_10 = arith.constant 0 : index
    %c0_11 = arith.constant 0 : index
    %13 = vector.load %arg3[%c0_10, %c0_11] : memref<8x2048xbf16, #tpu.memory_space<vmem>>, vector<8x2048xbf16>
    %14 = arith.truncf %11 : vector<2048x32xf32> to vector<2048x32xbf16>
    %cst_12 = arith.constant dense<0.000000e+00> : vector<8x32xf32>
    %15 = tpu.matmul %13, %14, %cst_12 {dimension_numbers = #tpu.dot_dimension_numbers<[1], [0], [0], [1], [0, 0, 1, 1], [], []>} : vector<8x2048xbf16>, vector<2048x32xbf16>, vector<8x32xf32> -> vector<8x32xf32>
    %16 = arith.addf %12, %15 : vector<8x32xf32>
    %c0_13 = arith.constant 0 : index
    %c0_14 = arith.constant 0 : index
    %17 = vector.load %arg9[%c0_13, %c0_14] : memref<8x32xf32, #tpu.memory_space<vmem>>, vector<8x32xf32>
    tpu.vector_store %arg9[%c0_13, %c0_14], %16 {strides = array<i32>} : memref<8x32xf32, #tpu.memory_space<vmem>>, vector<8x32xf32>,
    %c0_i32_15 = arith.constant 0 : i32
    %18 = arith.cmpi eq, %arg1, %c0_i32_15 : i32
    %19 = arith.extui %18 : i1 to i32
    %c0_i32_16 = arith.constant 0 : i32
    %20 = arith.cmpi ne, %19, %c0_i32_16 : i32
    scf.if %20 {
      %c0_17 = arith.constant 0 : index
      %c0_18 = arith.constant 0 : index
      %21 = vector.load %arg9[%c0_17, %c0_18] : memref<8x32xf32, #tpu.memory_space<vmem>>, vector<8x32xf32>
      %22 = arith.truncf %21 : vector<8x32xf32> to vector<8x32xbf16>
      %c0_19 = arith.constant 0 : index
      %c0_20 = arith.constant 0 : index
      %23 = vector.load %arg6[%c0_19, %c0_20] : memref<32x128xbf16, #tpu.memory_space<vmem>>, vector<32x128xbf16>
      %cst_21 = arith.constant dense<0.000000e+00> : vector<8x128xf32>
      %24 = tpu.matmul %22, %23, %cst_21 {dimension_numbers = #tpu.dot_dimension_numbers<[1], [0], [0], [1], [0, 0, 1, 1], [], []>} : vector<8x32xbf16>, vector<32x128xbf16>, vector<8x128xf32> -> vector<8x128xf32>
      %c0_22 = arith.constant 0 : index
      %c0_23 = arith.constant 0 : index
      %25 = vector.load %arg7[%c0_22, %c0_23] : memref<1x128xf32, #tpu.memory_space<vmem>>, vector<1x128xf32>
      %26 = vector.broadcast %25 : vector<1x128xf32> to vector<8x128xf32>
      %27 = arith.addf %24, %26 : vector<8x128xf32>
      %c0_24 = arith.constant 0 : index
      %c0_25 = arith.constant 0 : index
      %28 = vector.load %arg8[%c0_24, %c0_25] : memref<8x128xf32, #tpu.memory_space<vmem>>, vector<8x128xf32>
      tpu.vector_store %arg8[%c0_24, %c0_25], %27 {strides = array<i32>} : memref<8x128xf32, #tpu.memory_space<vmem>>, vector<8x128xf32>,
    } else {
    }
    return
  }
  func.func @transform_0(%arg0: i32, %arg1: i32) -> (i32, i32, i32) {
    %c0_i32 = arith.constant 0 : i32
    %c0_i32_0 = arith.constant 0 : i32
    return %arg0, %arg1, %c0_i32 : i32, i32, i32
  }
  func.func @transform_1(%arg0: i32, %arg1: i32) -> (i32, i32) {
    %c0_i32 = arith.constant 0 : i32
    %c0_i32_0 = arith.constant 0 : i32
    %c0_i32_1 = arith.constant 0 : i32
    return %c0_i32, %c0_i32_0 : i32, i32
  }
  func.func @transform_2(%arg0: i32, %arg1: i32) -> (i32, i32) {
    %c0_i32 = arith.constant 0 : i32
    %c0_i32_0 = arith.constant 0 : i32
    %c0_i32_1 = arith.constant 0 : i32
    return %c0_i32, %c0_i32_0 : i32, i32
  }
  func.func @transform_3(%arg0: i32, %arg1: i32) -> (i32, i32) {
    %c0_i32 = arith.constant 0 : i32
    %c0_i32_0 = arith.constant 0 : i32
    %c0_i32_1 = arith.constant 0 : i32
    return %c0_i32, %c0_i32_0 : i32, i32
  }
  func.func @transform_4(%arg0: i32, %arg1: i32) -> (i32, i32) {
    %c0_i32 = arith.constant 0 : i32
    %c0_i32_0 = arith.constant 0 : i32
    %c0_i32_1 = arith.constant 0 : i32
    return %c0_i32, %c0_i32_0 : i32, i32
  }
  func.func @transform_5(%arg0: i32, %arg1: i32) -> (i32, i32) {
    %c0_i32 = arith.constant 0 : i32
    %c0_i32_0 = arith.constant 0 : i32
    %c0_i32_1 = arith.constant 0 : i32
    return %c0_i32, %c0_i32_0 : i32, i32
  }
  func.func @transform_6(%arg0: i32, %arg1: i32) -> (i32, i32) {
    %c0_i32 = arith.constant 0 : i32
    %c0_i32_0 = arith.constant 0 : i32
    return %arg0, %c0_i32 : i32, i32
  }
}

</mosaic_0001>

<bundles_post_ra>
// kernel: tpu_custom_call.1
= control target key start
LH: loop header
LB: loop body
LE: loop exit
PB: predicated region body
PF: predicated region fallthrough
CT: control target
= control target key end

     0   :  { %vm1317_vm0 = vcmask 1041408   ;;  %vm932_vm1 = vcmask 31744   ;;  %s4996_s0 = inlined_call_operand.vmem [shape: bf16[8,256,4], index: 0, kind: input, shape index: {}]   ;;  %s4997_s1 = inlined_call_operand.vmem [shape: bf16[8,2048], index: 1, kind: input, shape index: {}]   ;;  %s4998_s2 = inlined_call_operand.vmem [shape: bf16[4,32], index: 2, kind: input, shape index: {}]   ;;  %s4999_s3 = inlined_call_operand.vmem [shape: f32[1,32], index: 3, kind: input, shape index: {}]   ;;  %s5000_s4 = inlined_call_operand.vmem [shape: bf16[32,128], index: 4, kind: input, shape index: {}]   ;;  %s5001_s5 = inlined_call_operand.vmem [shape: f32[1,128], index: 5, kind: input, shape index: {}]   ;;  %s5002_s6 = inlined_call_operand.hbm [shape: f32[8,128], index: 6, kind: output, shape index: {}]  }
   0x1   :  { %v287_v0 = vld [vmem:[%s4998_s2] sm:$0x3] }
   0x2   :  { %v1319_v1 = vsel %vm1317_vm0, %v287_v0, 0  ;;  %v3337_v2 = vld [vmem:[%s4996_s0] sm:$0xff] }
   0x3   :  { %1328 = vmatpush.bf16.msra.mxu0 %v1319_v1  ;;  %3468 = vmatpush.bf16.msra.mxu2 %v1319_v1 }
   0x4   :  { %11 = vsyncpa [#allocation4], 0  ;;  %3467 = vmatpush.bf16.msra.mxu1 %v1319_v1  ;;  %3469 = vmatpush.bf16.msra.mxu3 %v1319_v1  ;;  %v3338_v3 = vld [vmem:[%s4996_s0 + $0x8] sm:$0xff]  ;;  %v3339_v4 = vld [vmem:[%s4996_s0 + $0x10] sm:$0xff]  ;;  %vm29_vm2 = vcmask 261120   ;;  %s3503_s27 = smov [#allocation3]  }
   0x5   :  { %v3340_v5 = vld [vmem:[%s4996_s0 + $0x18] sm:$0xff]  ;;  %v3341_v6 = vld [vmem:[%s4996_s0 + $0x20] sm:$0xff]  ;;  %v3342_v7 = vld [vmem:[%s4996_s0 + $0x28] sm:$0xff]  ;;  %s2677_s28 = sshll.u32 %s3503_s27, 4  ;;  %s2679_s7 = sshll.u32 %s5002_s6, 4  ;;  %s2678_s28 = int_to_ptr.vmem [resolvable:$true] %s2677_s28  ;;  %s2680_s7 = int_to_ptr.hbm [resolvable:$true] %s2679_s7 }
   0x6   :  { %3200 = vmatmul.msk.bf16.vlgmr.msra.gmra.mxu0 %vm932_vm1, %v3337_v2  ;;  %v3343_v8 = vld [vmem:[%s4996_s0 + $0x30] sm:$0xff]  ;;  %v3434_v9 = vld [vmem:[%s4996_s0 + $0x308] sm:$0xff]  ;;  %v3404_v10 = vld [vmem:[%s4996_s0 + $0x218] sm:$0xff] }
   0x7   :  { %3297 = vmatmul.msk.bf16.vlgmr.msra.gmra.mxu3 %vm932_vm1, %v3434_v9  ;;  %v3344_v11 = vld [vmem:[%s4996_s0 + $0x38] sm:$0xff]  ;;  %v3435_v12 = vld [vmem:[%s4996_s0 + $0x310] sm:$0xff]  ;;  %3267 = vmatmul.msk.bf16.vlgmr.msra.gmra.mxu2 %vm932_vm1, %v3404_v10  ;;  %v3405_v13 = vld [vmem:[%s4996_s0 + $0x220] sm:$0xff] }
   0x8   :  { %v3345_v14 = vld [vmem:[%s4996_s0 + $0x40] sm:$0xff]  ;;  %v3436_v15 = vld [vmem:[%s4996_s0 + $0x318] sm:$0xff]  ;;  %v3406_v24 = vld [vmem:[%s4996_s0 + $0x228] sm:$0xff] }
   0x9   :  { %v3600_v17 = vld [vmem:[%s4999_s3] ss:$0 sm:$0xff]  ;;  %v3346_v25 = vld [vmem:[%s4996_s0 + $0x48] sm:$0xff]  ;;  %v3407_v34 = vld [vmem:[%s4996_s0 + $0x230] sm:$0xff] }
   0xa   :  { %v3437_v26 = vld [vmem:[%s4996_s0 + $0x320] sm:$0xff]  ;;  %v3347_v35 = vld [vmem:[%s4996_s0 + $0x50] sm:$0xff]  ;;  %v3438_v36 = vld [vmem:[%s4996_s0 + $0x328] sm:$0xff] }
   0xb   :  { %v3408_v44 = vld [vmem:[%s4996_s0 + $0x238] sm:$0xff]  ;;  %v3439_v46 = vld [vmem:[%s4996_s0 + $0x330] sm:$0xff]  ;;  %v3409_v54 = vld [vmem:[%s4996_s0 + $0x240] sm:$0xff] }
   0xc   :  { %v3348_v45 = vld [vmem:[%s4996_s0 + $0x58] sm:$0xff]  ;;  %v3349_v55 = vld [vmem:[%s4996_s0 + $0x60] sm:$0xff]  ;;  %v3410_v59 = vld [vmem:[%s4996_s0 + $0x248] sm:$0xff] }
   0xd   :  { %v3440_v56 = vld [vmem:[%s4996_s0 + $0x338] sm:$0xff]  ;;  %v3350_v60 = vld [vmem:[%s4996_s0 + $0x68] sm:$0xff]  ;;  %v3441_v61 = vld [vmem:[%s4996_s0 + $0x340] sm:$0xff] }
   0xe   :  { %v3378_v0 = vld [vmem:[%s4996_s0 + $0x148] sm:$0xff]  ;;  %v3411_v1 = vld [vmem:[%s4996_s0 + $0x250] sm:$0xff]  ;;  %v3412_v9 = vld [vmem:[%s4996_s0 + $0x258] sm:$0xff] }
   0xf   :  { %3241 = vmatmul.msk.bf16.vlgmr.msra.gmra.mxu1 %vm932_vm1, %v3378_v0  ;;  %v3351_v2 = vld [vmem:[%s4996_s0 + $0x70] sm:$0xff]  ;;  %v3352_v10 = vld [vmem:[%s4996_s0 + $0x78] sm:$0xff] }
  0x16   :  { %3201 = vmatmul.msk.bf16.gmra.mxu0 %vm932_vm1, %v3338_v3  ;;  %v3442_v3 = vld [vmem:[%s4996_s0 + $0x348] sm:$0xff] }
  0x17   :  { %3298 = vmatmul.msk.bf16.gmra.mxu3 %vm932_vm1, %v3435_v12  ;;  %3268 = vmatmul.msk.bf16.gmra.mxu2 %vm932_vm1, %v3405_v13 }
  0x26   :  { %3202 = vmatmul.msk.bf16.gmra.mxu0 %vm932_vm1, %v3339_v4 }
  0x27   :  { %3299 = vmatmul.msk.bf16.gmra.mxu3 %vm932_vm1, %v3436_v15  ;;  %3269 = vmatmul.msk.bf16.gmra.mxu2 %vm932_vm1, %v3406_v24 }
  0x36   :  { %3203 = vmatmul.msk.bf16.gmra.mxu0 %vm932_vm1, %v3340_v5 }
  0x37   :  { %3300 = vmatmul.msk.bf16.gmra.mxu3 %vm932_vm1, %v3437_v26  ;;  %3270 = vmatmul.msk.bf16.gmra.mxu2 %vm932_vm1, %v3407_v34  ;;  %v3353_v34 = vld [vmem:[%s4996_s0 + $0x80] sm:$0xff] }
  0x46   :  { %3204 = vmatmul.msk.bf16.gmra.mxu0 %vm932_vm1, %v3341_v6 }
  0x47   :  { %3301 = vmatmul.msk.bf16.gmra.mxu3 %vm932_vm1, %v3438_v36  ;;  %3271 = vmatmul.msk.bf16.gmra.mxu2 %vm932_vm1, %v3408_v44 }
  0x56   :  { %3205 = vmatmul.msk.bf16.gmra.mxu0 %vm932_vm1, %v3342_v7  ;;  %v3379_v7 = vld [vmem:[%s4996_s0 + $0x150] sm:$0xff] }
  0x57   :  { %3302 = vmatmul.msk.bf16.gmra.mxu3 %vm932_vm1, %v3439_v46  ;;  %3272 = vmatmul.msk.bf16.gmra.mxu2 %vm932_vm1, %v3409_v54 }
  0x58   :  { %3242 = vmatmul.msk.bf16.gmra.mxu1 %vm932_vm1, %v3379_v7 }
  0x66   :  { %3206 = vmatmul.msk.bf16.gmra.mxu0 %vm932_vm1, %v3343_v8 }
  0x67   :  { %3303 = vmatmul.msk.bf16.gmra.mxu3 %vm932_vm1, %v3440_v56  ;;  %3273 = vmatmul.msk.bf16.gmra.mxu2 %vm932_vm1, %v3410_v59  ;;  %v3414_v59 = vld [vmem:[%s4996_s0 + $0x268] sm:$0xff] }
  0x76   :  { %3207 = vmatmul.msk.bf16.gmra.mxu0 %vm932_vm1, %v3344_v11  ;;  %v3443_v11 = vld [vmem:[%s4996_s0 + $0x350] sm:$0xff] }
  0x77   :  { %3304 = vmatmul.msk.bf16.gmra.mxu3 %vm932_vm1, %v3441_v61  ;;  %3274 = vmatmul.msk.bf16.gmra.mxu2 %vm932_vm1, %v3411_v1  ;;  %v3445_v61 = vld [vmem:[%s4996_s0 + $0x360] sm:$0xff] }
  0x83   :  { %v1330_v16 = vpop.f32.mrf.mxu0 }
  0x84   :  { %v1331_v18 = vadd.f32 %v3600_v17, %v1330_v16 }
  0x86   :  { %3208 = vmatmul.msk.bf16.gmra.mxu0 %vm932_vm1, %v3345_v14  ;;  %v1970_v21 = vmax.f32 %v1331_v18, 0.0 }
  0x87   :  { %3305 = vmatmul.msk.bf16.gmra.mxu3 %vm932_vm1, %v3442_v3  ;;  %3275 = vmatmul.msk.bf16.gmra.mxu2 %vm932_vm1, %v3412_v9  ;;  %v3382_v3 = vld [vmem:[%s4996_s0 + $0x168] sm:$0xff] }
  0x8a   :  { %v3695_v5 = vpop.f32.mrf.mxu3  ;;  %v3715_v13 = vpop.f32.mrf.mxu2 }
  0x8b   :  { %v1332_v19 = vpop.f32.mrf.mxu0  ;;  %5005 = vst [vmem:[#allocation6_spill] sm:$0xff] %v3695_v5 }
  0x8c   :  { %v1333_v20 = vadd.f32 %v3600_v17, %v1332_v19 }
  0x8e   :  { %v1971_v22 = vmax.f32 %v1333_v20, 0.0  ;;  %v3380_v20 = vld [vmem:[%s4996_s0 + $0x158] sm:$0xff] }
  0x8f   :  { %3243 = vmatmul.msk.bf16.gmra.mxu1 %vm932_vm1, %v3380_v20  ;;  %v3383_v20 = vld [vmem:[%s4996_s0 + $0x170] sm:$0xff] }
  0x90   :  { %v3605_v23 = vpack.c.bf16 %v1971_v22, %v1970_v21 }
  0x92   :  { %v3701_v8 = vpop.f32.mrf.mxu3 }
  0x93   :  { %v1335_v27 = vpop.f32.mrf.mxu0  ;;  %5006 = vst [vmem:[#allocation7_spill] sm:$0xff] %v3701_v8 }
  0x94   :  { %v1336_v28 = vadd.f32 %v3600_v17, %v1335_v27 }
  0x96   :  { %3209 = vmatmul.msk.bf16.gmra.mxu0 %vm932_vm1, %v3346_v25  ;;  %v1972_v31 = vmax.f32 %v1336_v28, 0.0  ;;  %v3726_v25 = vpop.f32.mrf.mxu2 }
  0x97   :  { %3306 = vmatmul.msk.bf16.gmra.mxu3 %vm932_vm1, %v3443_v11 }
  0x9a   :  { %v3717_v14 = vpop.f32.mrf.mxu3 }
  0x9b   :  { %v1337_v29 = vpop.f32.mrf.mxu0 }
  0x9c   :  { %v1338_v30 = vadd.f32 %v3600_v17, %v1337_v29 }
  0x9e   :  { %v1973_v32 = vmax.f32 %v1338_v30, 0.0  ;;  %v3413_v30 = vld [vmem:[%s4996_s0 + $0x260] sm:$0xff] }
  0x9f   :  { %3276 = vmatmul.msk.bf16.gmra.mxu2 %vm932_vm1, %v3413_v30  ;;  %v3356_v30 = vld [vmem:[%s4996_s0 + $0x98] sm:$0xff] }
  0xa0   :  { %v3621_v33 = vpack.c.bf16 %v1973_v32, %v1972_v31 }
  0xa2   :  { %v3729_v26 = vpop.f32.mrf.mxu3 }
  0xa3   :  { %v1340_v37 = vpop.f32.mrf.mxu0  ;;  %5007 = vst [vmem:[#allocation8_spill] sm:$0xff] %v3729_v26 }
  0xa4   :  { %v1341_v38 = vadd.f32 %v3600_v17, %v1340_v37 }
  0xa6   :  { %3210 = vmatmul.msk.bf16.gmra.mxu0 %vm932_vm1, %v3347_v35  ;;  %v1974_v41 = vmax.f32 %v1341_v38, 0.0  ;;  %v3444_v35 = vld [vmem:[%s4996_s0 + $0x358] sm:$0xff] }
  0xa7   :  { %3307 = vmatmul.msk.bf16.gmra.mxu3 %vm932_vm1, %v3444_v35 }
  0xaa   :  { %v3749_v44 = vpop.f32.mrf.mxu3 }
  0xab   :  { %v1342_v39 = vpop.f32.mrf.mxu0 }
  0xac   :  { %v1343_v40 = vadd.f32 %v3600_v17, %v1342_v39 }
  0xae   :  { %v1975_v42 = vmax.f32 %v1343_v40, 0.0 }
  0xaf   :  { %3277 = vmatmul.msk.bf16.gmra.mxu2 %vm932_vm1, %v3414_v59  ;;  %v1666_v59 = vadd.f32 %v3600_v17, %v3715_v13  ;;  %v3358_v13 = vld [vmem:[%s4996_s0 + $0xa8] sm:$0xff] }
  0xb0   :  { %v3637_v43 = vpack.c.bf16 %v1975_v42, %v1974_v41  ;;  %v3747_v42 = vpop.f32.mrf.mxu2 }
  0xb3   :  { %v1345_v47 = vpop.f32.mrf.mxu0 }
  0xb4   :  { %v1346_v48 = vadd.f32 %v3600_v17, %v1345_v47 }
  0xb6   :  { %3211 = vmatmul.msk.bf16.gmra.mxu0 %vm932_vm1, %v3348_v45  ;;  %v1976_v51 = vmax.f32 %v1346_v48, 0.0 }
  0xb7   :  { %3308 = vmatmul.msk.bf16.gmra.mxu3 %vm932_vm1, %v3445_v61  ;;  %v3385_v61 = vld [vmem:[%s4996_s0 + $0x180] sm:$0xff] }
  0xb8   :  { %v3756_v56 = vpop.f32.mrf.mxu2 }
  0xbb   :  { %v1347_v49 = vpop.f32.mrf.mxu0 }
  0xbc   :  { %v1348_v50 = vadd.f32 %v3600_v17, %v1347_v49 }
  0xbe   :  { %v1977_v52 = vmax.f32 %v1348_v50, 0.0 }
  0xc0   :  { %v3653_v53 = vpack.c.bf16 %v1977_v52, %v1976_v51  ;;  %v3381_v52 = vld [vmem:[%s4996_s0 + $0x160] sm:$0xff] }
  0xc1   :  { %3244 = vmatmul.msk.bf16.gmra.mxu1 %vm932_vm1, %v3381_v52 }
  0xc3   :  { %v1350_v57 = vpop.f32.mrf.mxu0 }
  0xc4   :  { %v1351_v40 = vadd.f32 %v3600_v17, %v1350_v57  ;;  %v3759_v57 = vpop.f32.mrf.mxu3 }
  0xc6   :  { %3212 = vmatmul.msk.bf16.gmra.mxu0 %vm932_vm1, %v3349_v55  ;;  %v1978_v47 = vmax.f32 %v1351_v40, 0.0 }
  0xcb   :  { %v1352_v58 = vpop.f32.mrf.mxu0 }
  0xcc   :  { %v1353_v37 = vadd.f32 %v3600_v17, %v1352_v58 }
  0xce   :  { %v1979_v45 = vmax.f32 %v1353_v37, 0.0 }
  0xd0   :  { %v2239_v51 = vpack.c.bf16 %v1979_v45, %v1978_v47 }
  0xd1   :  { %3245 = vmatmul.msk.bf16.gmra.mxu1 %vm932_vm1, %v3382_v3  ;;  %v3418_v3 = vld [vmem:[%s4996_s0 + $0x288] sm:$0xff] }
  0xd3   :  { %v1355_v62 = vpop.f32.mrf.mxu0 }
  0xd4   :  { %v1356_v31 = vadd.f32 %v3600_v17, %v1355_v62 }
  0xd6   :  { %3213 = vmatmul.msk.bf16.gmra.mxu0 %vm932_vm1, %v3350_v60  ;;  %v1980_v41 = vmax.f32 %v1356_v31, 0.0  ;;  %v3354_v60 = vld [vmem:[%s4996_s0 + $0x88] sm:$0xff]  ;;  %v3447_v31 = vld [vmem:[%s4996_s0 + $0x370] sm:$0xff] }
  0xdb   :  { %v1357_v63 = vpop.f32.mrf.mxu0 }
  0xdc   :  { %v1358_v27 = vadd.f32 %v3600_v17, %v1357_v63  ;;  %v3777_v63 = vpop.f32.mrf.mxu2 }
  0xde   :  { %v1981_v38 = vmax.f32 %v1358_v27, 0.0 }
  0xe0   :  { %v2240_v46 = vpack.c.bf16 %v1981_v38, %v1980_v41 }
  0xe1   :  { %3246 = vmatmul.msk.bf16.gmra.mxu1 %vm932_vm1, %v3383_v20 }
  0xe3   :  { %v1360_v4 = vpop.f32.mrf.mxu0 }
  0xe4   :  { %v1361_v21 = vadd.f32 %v3600_v17, %v1360_v4 }
  0xe6   :  { %3214 = vmatmul.msk.bf16.gmra.mxu0 %vm932_vm1, %v3351_v2  ;;  %v1982_v32 = vmax.f32 %v1361_v21, 0.0 }
  0xeb   :  { %v1362_v6 = vpop.f32.mrf.mxu0 }
  0xec   :  { %v1363_v18 = vadd.f32 %v3600_v17, %v1362_v6 }
  0xee   :  { %v1983_v28 = vmax.f32 %v1363_v18, 0.0 }
  0xf0   :  { %v2241_v39 = vpack.c.bf16 %v1983_v28, %v1982_v32 }
  0xf3   :  { %v1365_v12 = vpop.f32.mrf.mxu0 }
  0xf4   :  { %v1366_v15 = vadd.f32 %v3600_v17, %v1365_v12 }
  0xf6   :  { %3215 = vmatmul.msk.bf16.gmra.mxu0 %vm932_vm1, %v3352_v10  ;;  %v1984_v22 = vmax.f32 %v1366_v15, 0.0  ;;  %v3355_v10 = vld [vmem:[%s4996_s0 + $0x90] sm:$0xff] }
  0xfb   :  { %v1367_v16 = vpop.f32.mrf.mxu0 }
  0xfc   :  { %v1368_v19 = vadd.f32 %v3600_v17, %v1367_v16 }
  0xfe   :  { %v1985_v24 = vmax.f32 %v1368_v19, 0.0 }
 0x100   :  { %v2242_v29 = vpack.c.bf16 %v1985_v24, %v1984_v22 }
 0x102   :  { %2419 = vmatpush.bf16.msrb.mxu1 %v2242_v29  ;;  %v3416_v29 = vld [vmem:[%s4996_s0 + $0x278] sm:$0xff] }
 0x103   :  { %v1370_v36 = vpop.f32.mrf.mxu0 }
 0x104   :  { %v1371_v48 = vadd.f32 %v3600_v17, %v1370_v36 }
 0x106   :  { %3216 = vmatmul.msk.bf16.gmra.mxu0 %vm932_vm1, %v3353_v34  ;;  %2420 = vmatpush.bf16.msrb.mxu1 %v2241_v39  ;;  %v1986_v54 = vmax.f32 %v1371_v48, 0.0  ;;  %v3384_v39 = vld [vmem:[%s4996_s0 + $0x178] sm:$0xff]  ;;  %v3417_v48 = vld [vmem:[%s4996_s0 + $0x280] sm:$0xff] }
 0x107   :  { %3247 = vmatmul.msk.bf16.gmra.mxu1 %vm932_vm1, %v3384_v39  ;;  %v1676_v39 = vadd.f32 %v3600_v17, %v3777_v63  ;;  %v3420_v63 = vld [vmem:[%s4996_s0 + $0x298] sm:$0xff] }
 0x10a   :  { %2421 = vmatpush.bf16.msrb.mxu1 %v2240_v46 }
 0x10b   :  { %v1372_v49 = vpop.f32.mrf.mxu0 }
 0x10c   :  { %v1373_v50 = vadd.f32 %v3600_v17, %v1372_v49  ;;  %v3357_v49 = vld [vmem:[%s4996_s0 + $0xa0] sm:$0xff] }
 0x10e   :  { %v1987_v55 = vmax.f32 %v1373_v50, 0.0  ;;  %2422 = vmatpush.bf16.msrb.mxu1 %v2239_v51  ;;  %v3448_v50 = vld [vmem:[%s4996_s0 + $0x378] sm:$0xff] }
 0x110   :  { %v3761_v58 = vpack.c.bf16 %v1987_v55, %v1986_v54 }
 0x112   :  { %2423 = vmatpush.bf16.msrb.mxu1 %v3653_v53  ;;  %v3779_v53 = vpop.f32.mrf.mxu3 }
 0x113   :  { %v1375_v62 = vpop.f32.mrf.mxu0 }
 0x114   :  { %v1376_v0 = vadd.f32 %v3600_v17, %v1375_v62 }
 0x116   :  { %3217 = vmatmul.msk.bf16.gmra.mxu0 %vm932_vm1, %v3354_v60  ;;  %2424 = vmatpush.bf16.msrb.mxu1 %v3637_v43  ;;  %v1988_v4 = vmax.f32 %v1376_v0, 0.0  ;;  %v3788_v43 = vpop.f32.mrf.mxu2  ;;  %v1668_v60 = vadd.f32 %v3600_v17, %v3726_v25  ;;  %v3449_v25 = vld [vmem:[%s4996_s0 + $0x380] sm:$0xff] }
 0x117   :  { %3248 = vmatmul.msk.bf16.gmra.mxu1 %vm932_vm1, %v3385_v61  ;;  %v3451_v61 = vld [vmem:[%s4996_s0 + $0x390] sm:$0xff] }
 0x11a   :  { %2425 = vmatpush.bf16.msrb.mxu1 %v3621_v33  ;;  %v3791_v7 = vpop.f32.mrf.mxu3  ;;  %v3415_v33 = vld [vmem:[%s4996_s0 + $0x270] sm:$0xff] }
 0x11b   :  { %v1377_v1 = vpop.f32.mrf.mxu0  ;;  %3278 = vmatmul.msk.bf16.gmra.mxu2 %vm932_vm1, %v3415_v33 }
 0x11c   :  { %v1378_v2 = vadd.f32 %v3600_v17, %v1377_v1  ;;  %v2104_v1 = vmax.f32 %v1666_v59, 0.0  ;;  %v2108_v59 = vmax.f32 %v1676_v39, 0.0 }
 0x11e   :  { %v1989_v6 = vmax.f32 %v1378_v2, 0.0  ;;  %2426 = vmatpush.bf16.msrb.mxu1 %v3605_v23  ;;  %v3446_v23 = vld [vmem:[%s4996_s0 + $0x368] sm:$0xff]  ;;  %v3807_v12 = vpop.f32.mrf.mxu2  ;;  %v2105_v2 = vmax.f32 %v1668_v60, 0.0 }
 0x11f   :  { %3309 = vmatmul.msk.bf16.gmra.mxu3 %vm932_vm1, %v3446_v23  ;;  %v1681_v39 = vadd.f32 %v3600_v17, %v3807_v12 }
 0x120   :  { %v3793_v9 = vpack.c.bf16 %v1989_v6, %v1988_v4  ;;  %v3896_v6 = vpack.c.bf16 %v2105_v2, %v2104_v1 }
 0x122   :  { %v3809_v15 = vpop.f32.mrf.mxu3  ;;  %5008 = vst [vmem:[#allocation9_spill] sm:$0xff] %v3896_v6 }
 0x123   :  { %v1380_v11 = vpop.f32.mrf.mxu0 }
 0x124   :  { %v1381_v16 = vadd.f32 %v3600_v17, %v1380_v11  ;;  %v1671_v11 = vadd.f32 %v3600_v17, %v3747_v42  ;;  %v3359_v42 = vld [vmem:[%s4996_s0 + $0xb0] sm:$0xff] }
 0x126   :  { %3218 = vmatmul.msk.bf16.gmra.mxu0 %vm932_vm1, %v3355_v10  ;;  %v1990_v21 = vmax.f32 %v1381_v16, 0.0  ;;  %v3816_v24 = vpop.f32.mrf.mxu2  ;;  %v1673_v16 = vadd.f32 %v3600_v17, %v3756_v56  ;;  %v3450_v56 = vld [vmem:[%s4996_s0 + $0x388] sm:$0xff] }
 0x12a   :  { %v3819_v27 = vpop.f32.mrf.mxu3 }
 0x12b   :  { %v1382_v18 = vpop.f32.mrf.mxu0  ;;  %3279 = vmatmul.msk.bf16.gmra.mxu2 %vm932_vm1, %v3416_v29  ;;  %v3419_v29 = vld [vmem:[%s4996_s0 + $0x290] sm:$0xff] }
 0x12c   :  { %v1383_v19 = vadd.f32 %v3600_v17, %v1382_v18  ;;  %v3386_v18 = vld [vmem:[%s4996_s0 + $0x188] sm:$0xff] }
 0x12d   :  { %3249 = vmatmul.msk.bf16.gmra.mxu1 %vm932_vm1, %v3386_v18 }
 0x12e   :  { %v1991_v22 = vmax.f32 %v1383_v19, 0.0  ;;  %v3835_v34 = vpop.f32.mrf.mxu2 }
 0x12f   :  { %3310 = vmatmul.msk.bf16.gmra.mxu3 %vm932_vm1, %v3447_v31 }
 0x130   :  { %v3821_v28 = vpack.c.bf16 %v1991_v22, %v1990_v21  ;;  %v2106_v21 = vmax.f32 %v1671_v11, 0.0  ;;  %v2107_v22 = vmax.f32 %v1673_v16, 0.0 }
 0x132   :  { %v3837_v35 = vpop.f32.mrf.mxu3  ;;  %v3926_v31 = vpack.c.bf16 %v2107_v22, %v2106_v21 }
 0x133   :  { %v1385_v32 = vpop.f32.mrf.mxu0 }
 0x134   :  { %v1386_v36 = vadd.f32 %v3600_v17, %v1385_v32  ;;  %5011 = vst [vmem:[#allocation12_spill] sm:$0xff] %v3926_v31  ;;  %v1535_v32 = vpop.f32.mrf.mxu1 }
 0x135   :  { %v1536_v2 = vadd.f32 %v3600_v17, %v1535_v32 }
 0x136   :  { %3219 = vmatmul.msk.bf16.gmra.mxu0 %vm932_vm1, %v3356_v30  ;;  %v1992_v40 = vmax.f32 %v1386_v36, 0.0  ;;  %v3844_v45 = vpop.f32.mrf.mxu2 }
 0x137   :  { %v2052_v16 = vmax.f32 %v1536_v2, 0.0 }
 0x13a   :  { %v3847_v46 = vpop.f32.mrf.mxu3 }
 0x13b   :  { %v1387_v37 = vpop.f32.mrf.mxu0  ;;  %3280 = vmatmul.msk.bf16.gmra.mxu2 %vm932_vm1, %v3417_v48 }
 0x13c   :  { %v1388_v38 = vadd.f32 %v3600_v17, %v1387_v37  ;;  %v1537_v48 = vpop.f32.mrf.mxu1 }
 0x13e   :  { %v1993_v41 = vmax.f32 %v1388_v38, 0.0  ;;  %v3865_v52 = vpop.f32.mrf.mxu2 }
 0x13f   :  { %3311 = vmatmul.msk.bf16.gmra.mxu3 %vm932_vm1, %v3448_v50 }
 0x140   :  { %v3849_v47 = vpack.c.bf16 %v1993_v41, %v1992_v40  ;;  %v1678_v40 = vadd.f32 %v3600_v17, %v3788_v43  ;;  %v3387_v41 = vld [vmem:[%s4996_s0 + $0x190] sm:$0xff]  ;;  %v3360_v43 = vld [vmem:[%s4996_s0 + $0xb8] sm:$0xff] }
 0x141   :  { %3250 = vmatmul.msk.bf16.gmra.mxu1 %vm932_vm1, %v3387_v41  ;;  %v3388_v41 = vld [vmem:[%s4996_s0 + $0x198] sm:$0xff] }
 0x142   :  { %v3867_v54 = vpop.f32.mrf.mxu3  ;;  %v2109_v60 = vmax.f32 %v1678_v40, 0.0  ;;  %v1683_v40 = vadd.f32 %v3600_v17, %v3816_v24  ;;  %v2110_v24 = vmax.f32 %v1681_v39, 0.0 }
 0x143   :  { %v3860_v51 = vpop.f32.mrf.mxu0 }
 0x144   :  { %v2111_v2 = vmax.f32 %v1683_v40, 0.0 }
 0x146   :  { %3220 = vmatmul.msk.bf16.gmra.mxu0 %vm932_vm1, %v3357_v49  ;;  %v3878_v62 = vpop.f32.mrf.mxu2 }
 0x14a   :  { %v3881_v0 = vpop.f32.mrf.mxu3 }
 0x14b   :  { %v3869_v55 = vpop.f32.mrf.mxu0  ;;  %3281 = vmatmul.msk.bf16.gmra.mxu2 %vm932_vm1, %v3418_v3  ;;  %v1538_v3 = vadd.f32 %v3600_v17, %v1537_v48 }
 0x14d   :  { %v2053_v18 = vmax.f32 %v1538_v3, 0.0  ;;  %v3421_v3 = vld [vmem:[%s4996_s0 + $0x2a0] sm:$0xff] }
 0x14e   :  { %v3899_v33 = vpop.f32.mrf.mxu2 }
 0x14f   :  { %3312 = vmatmul.msk.bf16.gmra.mxu3 %vm932_vm1, %v3449_v25  ;;  %v1540_v25 = vpop.f32.mrf.mxu1 }
 0x151   :  { %3251 = vmatmul.msk.bf16.gmra.mxu1 %vm932_vm1, %v3388_v41  ;;  %v4003_v41 = vpack.c.bf16 %v2111_v2, %v2110_v24 }
 0x152   :  { %v3901_v10 = vpop.f32.mrf.mxu3 }
 0x153   :  { %v3892_v4 = vpop.f32.mrf.mxu0  ;;  %5009 = vst [vmem:[#allocation10_spill] sm:$0xff] %v3901_v10 }
 0x154   :  { %5017 = vst [vmem:[#allocation18_spill] sm:$0xff] %v4003_v41 }
 0x156   :  { %3221 = vmatmul.msk.bf16.gmra.mxu0 %vm932_vm1, %v3358_v13  ;;  %v3910_v19 = vpop.f32.mrf.mxu2  ;;  %v3958_v13 = vpack.c.bf16 %v2109_v60, %v2108_v59 }
 0x158   :  { %5014 = vst [vmem:[#allocation15_spill] sm:$0xff] %v3958_v13 }
 0x15a   :  { %v3913_v20 = vpop.f32.mrf.mxu3 }
 0x15b   :  { %v1397_v23 = vpop.f32.mrf.mxu0  ;;  %5010 = vst [vmem:[#allocation11_spill] sm:$0xff] %v3913_v20  ;;  %3282 = vmatmul.msk.bf16.gmra.mxu2 %vm932_vm1, %v3419_v29 }
 0x15e   :  { %v3929_v36 = vpop.f32.mrf.mxu2 }
 0x15f   :  { %3313 = vmatmul.msk.bf16.gmra.mxu3 %vm932_vm1, %v3450_v56 }
 0x162   :  { %v3931_v37 = vpop.f32.mrf.mxu3 }
 0x163   :  { %v1400_v30 = vpop.f32.mrf.mxu0  ;;  %5012 = vst [vmem:[#allocation13_spill] sm:$0xff] %v3931_v37 }
 0x164   :  { %v1401_v48 = vadd.f32 %v3600_v17, %v1400_v30  ;;  %v1396_v30 = vadd.f32 %v3600_v17, %v3892_v4  ;;  %v1393_v4 = vadd.f32 %v3600_v17, %v3869_v55 }
 0x166   :  { %3222 = vmatmul.msk.bf16.gmra.mxu0 %vm932_vm1, %v3359_v42  ;;  %v3940_v49 = vpop.f32.mrf.mxu2  ;;  %v3966_v42 = vpack.c.bf16 %v2053_v18, %v2052_v16  ;;  %v1998_v16 = vmax.f32 %v1401_v48, 0.0  ;;  %v1686_v18 = vadd.f32 %v3600_v17, %v3835_v34  ;;  %v1391_v34 = vadd.f32 %v3600_v17, %v3860_v51 }
 0x167   :  { %v1996_v48 = vmax.f32 %v1396_v30, 0.0 }
 0x16a   :  { %v3943_v50 = vpop.f32.mrf.mxu3 }
 0x16b   :  { %v1402_v38 = vpop.f32.mrf.mxu0  ;;  %5013 = vst [vmem:[#allocation14_spill] sm:$0xff] %v3943_v50  ;;  %3283 = vmatmul.msk.bf16.gmra.mxu2 %vm932_vm1, %v3420_v63  ;;  %v1542_v63 = vpop.f32.mrf.mxu1 }
 0x16c   :  { %v1403_v56 = vadd.f32 %v3600_v17, %v1402_v38  ;;  %v1398_v38 = vadd.f32 %v3600_v17, %v1397_v23  ;;  %v3361_v23 = vld [vmem:[%s4996_s0 + $0xc0] sm:$0xff] }
 0x16e   :  { %v3961_v11 = vpop.f32.mrf.mxu2  ;;  %v1999_v12 = vmax.f32 %v1403_v56, 0.0  ;;  %v1541_v56 = vadd.f32 %v3600_v17, %v1540_v25  ;;  %v1997_v39 = vmax.f32 %v1398_v38, 0.0  ;;  %v2112_v25 = vmax.f32 %v1686_v18, 0.0 }
 0x16f   :  { %3314 = vmatmul.msk.bf16.gmra.mxu3 %vm932_vm1, %v3451_v61 }
 0x170   :  { %v2249_v40 = vpack.c.bf16 %v1999_v12, %v1998_v16  ;;  %v2054_v55 = vmax.f32 %v1541_v56, 0.0  ;;  %v2248_v24 = vpack.c.bf16 %v1997_v39, %v1996_v48  ;;  %v3362_v48 = vld [vmem:[%s4996_s0 + $0xc8] sm:$0xff] }
 0x172   :  { %v3963_v21 = vpop.f32.mrf.mxu3 }
 0x173   :  { %v1405_v1 = vpop.f32.mrf.mxu0  ;;  %5015 = vst [vmem:[#allocation16_spill] sm:$0xff] %v3963_v21 }
 0x174   :  { %v1406_v22 = vadd.f32 %v3600_v17, %v1405_v1 }
 0x176   :  { %3223 = vmatmul.msk.bf16.gmra.mxu0 %vm932_vm1, %v3360_v43  ;;  %v2000_v59 = vmax.f32 %v1406_v22, 0.0  ;;  %v3978_v43 = vpop.f32.mrf.mxu2  ;;  %v3452_v22 = vld [vmem:[%s4996_s0 + $0x398] sm:$0xff] }
 0x17a   :  { %v3982_v61 = vpop.f32.mrf.mxu3 }
 0x17b   :  { %v1407_v29 = vpop.f32.mrf.mxu0  ;;  %5016 = vst [vmem:[#allocation17_spill] sm:$0xff] %v3982_v61  ;;  %3284 = vmatmul.msk.bf16.gmra.mxu2 %vm932_vm1, %v3421_v3  ;;  %v1994_v3 = vmax.f32 %v1391_v34, 0.0  ;;  %v3422_v34 = vld [vmem:[%s4996_s0 + $0x2a8] sm:$0xff]  ;;  %v1706_v61 = vadd.f32 %v3600_v17, %v3961_v11 }
 0x17c   :  { %v1408_v32 = vadd.f32 %v3600_v17, %v1407_v29  ;;  %v3426_v11 = vld [vmem:[%s4996_s0 + $0x2c8] sm:$0xff] }
 0x17d   :  { %v2120_v21 = vmax.f32 %v1706_v61, 0.0 }
 0x17e   :  { %v2001_v60 = vmax.f32 %v1408_v32, 0.0  ;;  %v1543_v32 = vadd.f32 %v3600_v17, %v1542_v63  ;;  %v4010_v63 = vpop.f32.mrf.mxu2 }
 0x17f   :  { %3315 = vmatmul.msk.bf16.gmra.mxu3 %vm932_vm1, %v3452_v22  ;;  %v3389_v22 = vld [vmem:[%s4996_s0 + $0x1a0] sm:$0xff] }
 0x180   :  { %v2250_v1 = vpack.c.bf16 %v2001_v60, %v2000_v59  ;;  %v1545_v59 = vpop.f32.mrf.mxu1  ;;  %v1688_v60 = vadd.f32 %v3600_v17, %v3844_v45  ;;  %v2055_v38 = vmax.f32 %v1543_v32, 0.0  ;;  %3252 = vmatmul.msk.bf16.gmra.mxu1 %vm932_vm1, %v3389_v22  ;;  %v3390_v22 = vld [vmem:[%s4996_s0 + $0x1a8] sm:$0xff] }
 0x182   :  { %2432 = vmatpush.bf16.msrb.mxu2 %v2250_v1  ;;  %v4012_v12 = vpop.f32.mrf.mxu3  ;;  %v1995_v1 = vmax.f32 %v1393_v4, 0.0  ;;  %v2113_v2 = vmax.f32 %v1688_v60, 0.0 }
 0x183   :  { %v1410_v29 = vpop.f32.mrf.mxu0  ;;  %5018 = vst [vmem:[#allocation19_spill] sm:$0xff] %v4012_v12  ;;  %v3457_v12 = vld [vmem:[%s4996_s0 + $0x3c0] sm:$0xff] }
 0x184   :  { %v1411_v51 = vadd.f32 %v3600_v17, %v1410_v29  ;;  %v4015_v30 = vpack.c.bf16 %v2113_v2, %v2112_v25  ;;  %v2247_v18 = vpack.c.bf16 %v1995_v1, %v1994_v3  ;;  %v3453_v25 = vld [vmem:[%s4996_s0 + $0x3a0] sm:$0xff] }
 0x186   :  { %3224 = vmatmul.msk.bf16.gmra.mxu0 %vm932_vm1, %v3361_v23  ;;  %2433 = vmatpush.bf16.msrb.mxu2 %v2249_v40  ;;  %5019 = vst [vmem:[#allocation20_spill] sm:$0xff] %v4015_v30  ;;  %v4017_v23 = vpack.c.bf16 %v2055_v38, %v2054_v55  ;;  %v2002_v56 = vmax.f32 %v1411_v51, 0.0  ;;  %v4023_v39 = vpop.f32.mrf.mxu2  ;;  %v1546_v55 = vadd.f32 %v3600_v17, %v1545_v59 }
 0x188   :  { %v1547_v4 = vpop.f32.mrf.mxu1 }
 0x189   :  { %v1548_v38 = vadd.f32 %v3600_v17, %v1547_v4 }
 0x18a   :  { %2434 = vmatpush.bf16.msrb.mxu2 %v2248_v24  ;;  %v4026_v29 = vpop.f32.mrf.mxu3  ;;  %v2056_v24 = vmax.f32 %v1546_v55, 0.0 }
 0x18b   :  { %v1412_v16 = vpop.f32.mrf.mxu0  ;;  %5020 = vst [vmem:[#allocation21_spill] sm:$0xff] %v4026_v29  ;;  %3285 = vmatmul.msk.bf16.gmra.mxu2 %vm932_vm1, %v3422_v34  ;;  %v2057_v2 = vmax.f32 %v1548_v38, 0.0 }
 0x18c   :  { %v1413_v45 = vadd.f32 %v3600_v17, %v1412_v16 }
 0x18d   :  { %v4052_v16 = vpack.c.bf16 %v2057_v2, %v2056_v24 }
 0x18e   :  { %v2003_v32 = vmax.f32 %v1413_v45, 0.0  ;;  %2435 = vmatpush.bf16.msrb.mxu2 %v2247_v18  ;;  %v4046_v1 = vpop.f32.mrf.mxu2  ;;  %v1691_v18 = vadd.f32 %v3600_v17, %v3865_v52 }
 0x18f   :  { %3316 = vmatmul.msk.bf16.gmra.mxu3 %vm932_vm1, %v3453_v25 }
 0x190   :  { %v4028_v40 = vpack.c.bf16 %v2003_v32, %v2002_v56  ;;  %3253 = vmatmul.msk.bf16.gmra.mxu1 %vm932_vm1, %v3390_v22 }
 0x192   :  { %2436 = vmatpush.bf16.msrb.mxu2 %v3849_v47  ;;  %v1550_v47 = vpop.f32.mrf.mxu1  ;;  %v4048_v3 = vpop.f32.mrf.mxu3 }
 0x193   :  { %v1415_v60 = vpop.f32.mrf.mxu0  ;;  %5021 = vst [vmem:[#allocation22_spill] sm:$0xff] %v4048_v3  ;;  %v1551_v38 = vadd.f32 %v3600_v17, %v1550_v47 }
 0x194   :  { %v1416_v51 = vadd.f32 %v3600_v17, %v1415_v60  ;;  %v3363_v60 = vld [vmem:[%s4996_s0 + $0xd0] sm:$0xff] }
 0x196   :  { %3225 = vmatmul.msk.bf16.gmra.mxu0 %vm932_vm1, %v3362_v48  ;;  %2437 = vmatpush.bf16.msrb.mxu2 %v3821_v28  ;;  %v1693_v28 = vadd.f32 %v3600_v17, %v3878_v62  ;;  %v2004_v56 = vmax.f32 %v1416_v51, 0.0  ;;  %v4063_v4 = vpop.f32.mrf.mxu2  ;;  %v2114_v48 = vmax.f32 %v1691_v18, 0.0  ;;  %v3423_v62 = vld [vmem:[%s4996_s0 + $0x2b0] sm:$0xff] }
 0x198   :  { %v2115_v52 = vmax.f32 %v1693_v28, 0.0 }
 0x19a   :  { %2438 = vmatpush.bf16.msrb.mxu2 %v3793_v9  ;;  %v1552_v9 = vpop.f32.mrf.mxu1  ;;  %v4066_v34 = vpop.f32.mrf.mxu3  ;;  %v4083_v2 = vpack.c.bf16 %v2115_v52, %v2114_v48  ;;  %v1698_v48 = vadd.f32 %v3600_v17, %v3910_v19  ;;  %v3391_v52 = vld [vmem:[%s4996_s0 + $0x1b0] sm:$0xff]  ;;  %v3364_v19 = vld [vmem:[%s4996_s0 + $0xd8] sm:$0xff] }
 0x19b   :  { %v1417_v59 = vpop.f32.mrf.mxu0  ;;  %5022 = vst [vmem:[#allocation23_spill] sm:$0xff] %v4066_v34  ;;  %v1553_v24 = vadd.f32 %v3600_v17, %v1552_v9  ;;  %3286 = vmatmul.msk.bf16.gmra.mxu2 %vm932_vm1, %v3423_v62  ;;  %v1696_v9 = vadd.f32 %v3600_v17, %v3899_v33  ;;  %v3424_v33 = vld [vmem:[%s4996_s0 + $0x2b8] sm:$0xff] }
 0x19c   :  { %v1418_v45 = vadd.f32 %v3600_v17, %v1417_v59 }
 0x19d   :  { %v2059_v18 = vmax.f32 %v1553_v24, 0.0  ;;  %v2116_v24 = vmax.f32 %v1696_v9, 0.0 }
 0x19e   :  { %v2005_v32 = vmax.f32 %v1418_v45, 0.0  ;;  %2439 = vmatpush.bf16.msrb.mxu2 %v3761_v58  ;;  %v3454_v58 = vld [vmem:[%s4996_s0 + $0x3a8] sm:$0xff]  ;;  %v4086_v59 = vpop.f32.mrf.mxu2  ;;  %v2058_v45 = vmax.f32 %v1551_v38, 0.0 }
 0x19f   :  { %3317 = vmatmul.msk.bf16.gmra.mxu3 %vm932_vm1, %v3454_v58 }
 0x1a0   :  { %v4068_v25 = vpack.c.bf16 %v2005_v32, %v2004_v56  ;;  %v4091_v56 = vpack.c.bf16 %v2059_v18, %v2058_v45  ;;  %3254 = vmatmul.msk.bf16.gmra.mxu1 %vm932_vm1, %v3391_v52  ;;  %v2117_v45 = vmax.f32 %v1698_v48, 0.0 }
 0x1a2   :  { %v1555_v51 = vpop.f32.mrf.mxu1  ;;  %v4088_v28 = vpop.f32.mrf.mxu3  ;;  %v4121_v48 = vpack.c.bf16 %v2117_v45, %v2116_v24  ;;  %v1701_v24 = vadd.f32 %v3600_v17, %v3929_v36  ;;  %v1703_v45 = vadd.f32 %v3600_v17, %v3940_v49  ;;  %v3425_v49 = vld [vmem:[%s4996_s0 + $0x2c0] sm:$0xff] }
 0x1a3   :  { %v1420_v55 = vpop.f32.mrf.mxu0  ;;  %5023 = vst [vmem:[#allocation24_spill] sm:$0xff] %v4088_v28  ;;  %v1711_v28 = vadd.f32 %v3600_v17, %v4010_v63  ;;  %v3427_v63 = vld [vmem:[%s4996_s0 + $0x2d0] sm:$0xff] }
 0x1a4   :  { %v1421_v22 = vadd.f32 %v3600_v17, %v1420_v55 }
 0x1a6   :  { %3226 = vmatmul.msk.bf16.gmra.mxu0 %vm932_vm1, %v3363_v60  ;;  %v2006_v62 = vmax.f32 %v1421_v22, 0.0  ;;  %v4101_v38 = vpop.f32.mrf.mxu2  ;;  %v3455_v22 = vld [vmem:[%s4996_s0 + $0x3b0] sm:$0xff] }
 0x1aa   :  { %v1557_v58 = vpop.f32.mrf.mxu1  ;;  %v4104_v55 = vpop.f32.mrf.mxu3 }
 0x1ab   :  { %v1422_v47 = vpop.f32.mrf.mxu0  ;;  %5024 = vst [vmem:[#allocation25_spill] sm:$0xff] %v4104_v55  ;;  %v1558_v9 = vadd.f32 %v3600_v17, %v1557_v58  ;;  %3287 = vmatmul.msk.bf16.gmra.mxu2 %vm932_vm1, %v3424_v33 }
 0x1ac   :  { %v1423_v32 = vadd.f32 %v3600_v17, %v1422_v47 }
 0x1ad   :  { %v2061_v20 = vmax.f32 %v1558_v9, 0.0 }
 0x1ae   :  { %v2007_v60 = vmax.f32 %v1423_v32, 0.0  ;;  %v1556_v32 = vadd.f32 %v3600_v17, %v1555_v51 }
 0x1af   :  { %3318 = vmatmul.msk.bf16.gmra.mxu3 %vm932_vm1, %v3455_v22 }
 0x1b0   :  { %v4106_v18 = vpack.c.bf16 %v2007_v60, %v2006_v62  ;;  %v4126_v62 = vpop.f32.mrf.mxu2  ;;  %v2060_v60 = vmax.f32 %v1556_v32, 0.0 }
 0x1b2   :  { %v4124_v52 = vpop.f32.mrf.mxu1  ;;  %v4128_v10 = vpop.f32.mrf.mxu3  ;;  %v4131_v58 = vpack.c.bf16 %v2061_v20, %v2060_v60  ;;  %v2119_v60 = vmax.f32 %v1703_v45, 0.0 }
 0x1b3   :  { %v1425_v47 = vpop.f32.mrf.mxu0  ;;  %5025 = vst [vmem:[#allocation26_spill] sm:$0xff] %v4128_v10  ;;  %v3458_v10 = vld [vmem:[%s4996_s0 + $0x3c8] sm:$0xff] }
 0x1b4   :  { %v1426_v51 = vadd.f32 %v3600_v17, %v1425_v47 }
 0x1b6   :  { %3227 = vmatmul.msk.bf16.gmra.mxu0 %vm932_vm1, %v3364_v19  ;;  %v3392_v19 = vld [vmem:[%s4996_s0 + $0x1b8] sm:$0xff]  ;;  %v2008_v22 = vmax.f32 %v1426_v51, 0.0  ;;  %v3365_v51 = vld [vmem:[%s4996_s0 + $0xe0] sm:$0xff] }
 0x1b7   :  { %3255 = vmatmul.msk.bf16.gmra.mxu1 %vm932_vm1, %v3392_v19 }
 0x1b8   :  { %v4143_v47 = vpop.f32.mrf.mxu2 }
 0x1ba   :  { %v4141_v9 = vpop.f32.mrf.mxu1  ;;  %v4146_v20 = vpop.f32.mrf.mxu3 }
 0x1bb   :  { %v1427_v50 = vpop.f32.mrf.mxu0  ;;  %5026 = vst [vmem:[#allocation27_spill] sm:$0xff] %v4146_v20  ;;  %3288 = vmatmul.msk.bf16.gmra.mxu2 %vm932_vm1, %v3425_v49  ;;  %v1708_v49 = vadd.f32 %v3600_v17, %v3978_v43  ;;  %v3366_v43 = vld [vmem:[%s4996_s0 + $0xe8] sm:$0xff]  ;;  %v1713_v20 = vadd.f32 %v3600_v17, %v4023_v39  ;;  %v3367_v39 = vld [vmem:[%s4996_s0 + $0xf0] sm:$0xff] }
 0x1bc   :  { %v1428_v33 = vadd.f32 %v3600_v17, %v1427_v50  ;;  %v2118_v50 = vmax.f32 %v1701_v24, 0.0 }
 0x1bd   :  { %v2121_v29 = vmax.f32 %v1708_v49, 0.0 }
 0x1be   :  { %v2009_v32 = vmax.f32 %v1428_v33, 0.0  ;;  %v3456_v33 = vld [vmem:[%s4996_s0 + $0x3b8] sm:$0xff]  ;;  %v4163_v24 = vpack.c.bf16 %v2119_v60, %v2118_v50  ;;  %v3393_v50 = vld [vmem:[%s4996_s0 + $0x1c0] sm:$0xff] }
 0x1bf   :  { %3319 = vmatmul.msk.bf16.gmra.mxu3 %vm932_vm1, %v3456_v33  ;;  %v4201_v61 = vpack.c.bf16 %v2121_v29, %v2120_v21  ;;  %v3394_v21 = vld [vmem:[%s4996_s0 + $0x1c8] sm:$0xff] }
 0x1c0   :  { %v4148_v36 = vpack.c.bf16 %v2009_v32, %v2008_v22  ;;  %v4168_v19 = vpop.f32.mrf.mxu2 }
 0x1c2   :  { %v4166_v45 = vpop.f32.mrf.mxu1  ;;  %v4170_v22 = vpop.f32.mrf.mxu3 }
 0x1c3   :  { %v4159_v37 = vpop.f32.mrf.mxu0  ;;  %5027 = vst [vmem:[#allocation28_spill] sm:$0xff] %v4170_v22 }
 0x1c6   :  { %3228 = vmatmul.msk.bf16.gmra.mxu0 %vm932_vm1, %v3365_v51 }
 0x1c7   :  { %3256 = vmatmul.msk.bf16.gmra.mxu1 %vm932_vm1, %v3393_v50 }
 0x1c8   :  { %v4183_v51 = vpop.f32.mrf.mxu2 }
 0x1ca   :  { %v4181_v60 = vpop.f32.mrf.mxu1  ;;  %v4186_v33 = vpop.f32.mrf.mxu3 }
 0x1cb   :  { %v4172_v32 = vpop.f32.mrf.mxu0  ;;  %5028 = vst [vmem:[#allocation29_spill] sm:$0xff] %v4186_v33  ;;  %3289 = vmatmul.msk.bf16.gmra.mxu2 %vm932_vm1, %v3426_v11 }
 0x1cf   :  { %3320 = vmatmul.msk.bf16.gmra.mxu3 %vm932_vm1, %v3457_v12 }
 0x1d0   :  { %v4204_v50 = vpop.f32.mrf.mxu2 }
 0x1d2   :  { %v1570_v49 = vpop.f32.mrf.mxu1  ;;  %v4206_v3 = vpop.f32.mrf.mxu3 }
 0x1d3   :  { %v4197_v34 = vpop.f32.mrf.mxu0  ;;  %5029 = vst [vmem:[#allocation30_spill] sm:$0xff] %v4206_v3  ;;  %v2123_v3 = vmax.f32 %v1713_v20, 0.0  ;;  %v1571_v22 = vadd.f32 %v3600_v17, %v1570_v49  ;;  %v1716_v49 = vadd.f32 %v3600_v17, %v4046_v1  ;;  %v3368_v1 = vld [vmem:[%s4996_s0 + $0xf8] sm:$0xff] }
 0x1d5   :  { %v2066_v6 = vmax.f32 %v1571_v22, 0.0 }
 0x1d6   :  { %3229 = vmatmul.msk.bf16.gmra.mxu0 %vm932_vm1, %v3366_v43  ;;  %v2122_v43 = vmax.f32 %v1711_v28, 0.0 }
 0x1d7   :  { %3257 = vmatmul.msk.bf16.gmra.mxu1 %vm932_vm1, %v3394_v21 }
 0x1d8   :  { %v4217_v29 = vpop.f32.mrf.mxu2  ;;  %v4235_v28 = vpack.c.bf16 %v2123_v3, %v2122_v43  ;;  %v3395_v3 = vld [vmem:[%s4996_s0 + $0x1d0] sm:$0xff] }
 0x1da   :  { %v1572_v12 = vpop.f32.mrf.mxu1  ;;  %v4220_v11 = vpop.f32.mrf.mxu3 }
 0x1db   :  { %v4208_v55 = vpop.f32.mrf.mxu0  ;;  %5030 = vst [vmem:[#allocation31_spill] sm:$0xff] %v4220_v11  ;;  %v1573_v21 = vadd.f32 %v3600_v17, %v1572_v12  ;;  %3290 = vmatmul.msk.bf16.gmra.mxu2 %vm932_vm1, %v3427_v63  ;;  %v2124_v63 = vmax.f32 %v1716_v49, 0.0 }
 0x1dd   :  { %v2067_v31 = vmax.f32 %v1573_v21, 0.0 }
 0x1df   :  { %3321 = vmatmul.msk.bf16.gmra.mxu3 %vm932_vm1, %v3458_v10  ;;  %v4242_v30 = vpack.c.bf16 %v2067_v31, %v2066_v6  ;;  %v1718_v10 = vadd.f32 %v3600_v17, %v4063_v4  ;;  %v3428_v31 = vld [vmem:[%s4996_s0 + $0x2d8] sm:$0xff]  ;;  %v3459_v4 = vld [vmem:[%s4996_s0 + $0x3d0] sm:$0xff] }
 0x1e0   :  { %v4238_v11 = vpop.f32.mrf.mxu2 }
 0x1e1   :  { %v2125_v6 = vmax.f32 %v1718_v10, 0.0 }
 0x1e2   :  { %v1575_v20 = vpop.f32.mrf.mxu1  ;;  %v4240_v13 = vpop.f32.mrf.mxu3 }
 0x1e3   :  { %v1440_v33 = vpop.f32.mrf.mxu0  ;;  %5031 = vst [vmem:[#allocation32_spill] sm:$0xff] %v4240_v13  ;;  %v1576_v21 = vadd.f32 %v3600_v17, %v1575_v20  ;;  %v4269_v49 = vpack.c.bf16 %v2125_v6, %v2124_v63  ;;  %v4279_v20 = vld [vmem:[%s4999_s3] ss:$0 sm:$0xff] }
 0x1e5   :  { %v2068_v13 = vmax.f32 %v1576_v21, 0.0  ;;  %v3396_v21 = vld [vmem:[%s4996_s0 + $0x1d8] sm:$0xff] }
 0x1e6   :  { %3230 = vmatmul.msk.bf16.gmra.mxu0 %vm932_vm1, %v3367_v39 }
 0x1e7   :  { %3258 = vmatmul.msk.bf16.gmra.mxu1 %vm932_vm1, %v3395_v3 }
 0x1e8   :  { %v4251_v43 = vpop.f32.mrf.mxu2 }
 0x1ea   :  { %v1577_v12 = vpop.f32.mrf.mxu1  ;;  %v4254_v22 = vpop.f32.mrf.mxu3 }
 0x1eb   :  { %v1442_v41 = vpop.f32.mrf.mxu0  ;;  %5032 = vst [vmem:[#allocation33_spill] sm:$0xff] %v4254_v22  ;;  %v1578_v3 = vadd.f32 %v3600_v17, %v1577_v12  ;;  %3291 = vmatmul.msk.bf16.gmra.mxu2 %vm932_vm1, %v3428_v31 }
 0x1ec   :  { %v1443_v63 = vadd.f32 %v4279_v20, %v1442_v41  ;;  %v1438_v41 = vadd.f32 %v4279_v20, %v4208_v55  ;;  %v3369_v55 = vld [vmem:[%s4996_s0 + $0x100] sm:$0xff] }
 0x1ed   :  { %v2069_v8 = vmax.f32 %v1578_v3, 0.0  ;;  %v1441_v3 = vadd.f32 %v4279_v20, %v1440_v33  ;;  %v3429_v33 = vld [vmem:[%s4996_s0 + $0x2e0] sm:$0xff] }
 0x1ef   :  { %3322 = vmatmul.msk.bf16.gmra.mxu3 %vm932_vm1, %v3459_v4  ;;  %v4282_v31 = vpack.c.bf16 %v2069_v8, %v2068_v13  ;;  %v1723_v4 = vadd.f32 %v4279_v20, %v4101_v38 }
 0x1f0   :  { %v4272_v22 = vpop.f32.mrf.mxu2 }
 0x1f1   :  { %5033 = vst [vmem:[#allocation34_spill] sm:$0xff] %v4272_v22  ;;  %v2127_v26 = vmax.f32 %v1723_v4, 0.0 }
 0x1f2   :  { %v1580_v10 = vpop.f32.mrf.mxu1  ;;  %v4274_v5 = vpop.f32.mrf.mxu3 }
 0x1f3   :  { %v1445_v39 = vpop.f32.mrf.mxu0  ;;  %5034 = vst [vmem:[#allocation35_spill] sm:$0xff] %v4274_v5 }
 0x1f4   :  { %v1446_v17 = vadd.f32 %v4279_v20, %v1445_v39 }
 0x1f6   :  { %3231 = vmatmul.msk.bf16.gmra.mxu0 %vm932_vm1, %v3368_v1  ;;  %v1721_v1 = vadd.f32 %v4279_v20, %v4086_v59  ;;  %v2016_v39 = vmax.f32 %v1446_v17, 0.0  ;;  %v1436_v17 = vadd.f32 %v4279_v20, %v4197_v34  ;;  %v1433_v34 = vadd.f32 %v4279_v20, %v4172_v32 }
 0x1f7   :  { %3259 = vmatmul.msk.bf16.gmra.mxu1 %vm932_vm1, %v3396_v21  ;;  %v1726_v21 = vadd.f32 %v4279_v20, %v4126_v62  ;;  %v1431_v62 = vadd.f32 %v4279_v20, %v4159_v37 }
 0x1f8   :  { %v4294_v13 = vpop.f32.mrf.mxu2  ;;  %v2126_v22 = vmax.f32 %v1721_v1, 0.0  ;;  %v1581_v1 = vadd.f32 %v4279_v20, %v1580_v10 }
 0x1f9   :  { %5035 = vst [vmem:[#allocation36_spill] sm:$0xff] %v4294_v13  ;;  %v2128_v10 = vmax.f32 %v1726_v21, 0.0 }
 0x1fa   :  { %v1582_v8 = vpop.f32.mrf.mxu1  ;;  %v4299_v59 = vpop.f32.mrf.mxu3  ;;  %v2070_v32 = vmax.f32 %v1581_v1, 0.0  ;;  %v3397_v1 = vld [vmem:[%s4996_s0 + $0x1e0] sm:$0xff] }
 0x1fb   :  { %v1447_v12 = vpop.f32.mrf.mxu0  ;;  %5036 = vst [vmem:[#allocation37_spill] sm:$0xff] %v4299_v59  ;;  %v1583_v4 = vadd.f32 %v4279_v20, %v1582_v8  ;;  %3292 = vmatmul.msk.bf16.gmra.mxu2 %vm932_vm1, %v3429_v33  ;;  %v2012_v59 = vmax.f32 %v1436_v17, 0.0  ;;  %v1728_v33 = vadd.f32 %v4279_v20, %v4143_v47 }
 0x1fc   :  { %v1448_v6 = vadd.f32 %v4279_v20, %v1447_v12  ;;  %v2015_v12 = vmax.f32 %v1443_v63, 0.0 }
 0x1fe   :  { %v2017_v5 = vmax.f32 %v1448_v6, 0.0  ;;  %v2014_v6 = vmax.f32 %v1441_v3, 0.0  ;;  %v2013_v3 = vmax.f32 %v1438_v41, 0.0  ;;  %v2071_v41 = vmax.f32 %v1583_v4, 0.0 }
 0x200   :  { %v2258_v38 = vpack.c.bf16 %v2017_v5, %v2016_v39  ;;  %v3460_v5 = vld [vmem:[%s4996_s0 + $0x3d8] sm:$0xff]  ;;  %v2257_v39 = vpack.c.bf16 %v2015_v12, %v2014_v6  ;;  %v4327_v13 = vpop.f32.mrf.mxu2  ;;  %v2129_v6 = vmax.f32 %v1728_v33, 0.0  ;;  %v4334_v21 = vpack.c.bf16 %v2071_v41, %v2070_v32  ;;  %v3370_v33 = vld [vmem:[%s4996_s0 + $0x108] sm:$0xff]  ;;  %v3461_v32 = vld [vmem:[%s4996_s0 + $0x3e0] sm:$0xff] }
 0x201   :  { %3323 = vmatmul.msk.bf16.gmra.mxu3 %vm932_vm1, %v3460_v5  ;;  %5037 = vst [vmem:[#allocation38_spill] sm:$0xff] %v4327_v13  ;;  %v2010_v5 = vmax.f32 %v1431_v62, 0.0 }
 0x202   :  { %2445 = vmatpush.bf16.msrb.mxu3 %v2258_v38  ;;  %v4320_v38 = vpack.c.bf16 %v2127_v26, %v2126_v22  ;;  %v1585_v8 = vpop.f32.mrf.mxu1  ;;  %v4329_v12 = vpop.f32.mrf.mxu3  ;;  %v2011_v26 = vmax.f32 %v1433_v34, 0.0  ;;  %v2256_v22 = vpack.c.bf16 %v2013_v3, %v2012_v59  ;;  %v4332_v17 = vpack.c.bf16 %v2129_v6, %v2128_v10  ;;  %v3430_v10 = vld [vmem:[%s4996_s0 + $0x2e8] sm:$0xff] }
 0x203   :  { %v1450_v63 = vpop.f32.mrf.mxu0  ;;  %5038 = vst [vmem:[#allocation39_spill] sm:$0xff] %v4329_v12  ;;  %v1568_v6 = vadd.f32 %v4279_v20, %v4181_v60 }
 0x204   :  { %v1451_v37 = vadd.f32 %v4279_v20, %v1450_v63 }
 0x206   :  { %3232 = vmatmul.msk.bf16.gmra.mxu0 %vm932_vm1, %v3369_v55  ;;  %2446 = vmatpush.bf16.msrb.mxu3 %v2257_v39  ;;  %v2255_v39 = vpack.c.bf16 %v2011_v26, %v2010_v5  ;;  %v2018_v4 = vmax.f32 %v1451_v37, 0.0  ;;  %v1586_v26 = vadd.f32 %v4279_v20, %v1585_v8 }
 0x207   :  { %3260 = vmatmul.msk.bf16.gmra.mxu1 %vm932_vm1, %v3397_v1 }
 0x208   :  { %v4340_v3 = vpop.f32.mrf.mxu2  ;;  %v2072_v8 = vmax.f32 %v1586_v26, 0.0 }
 0x209   :  { %5039 = vst [vmem:[#allocation40_spill] sm:$0xff] %v4340_v3 }
 0x20a   :  { %2447 = vmatpush.bf16.msrb.mxu3 %v2256_v22  ;;  %v1587_v59 = vpop.f32.mrf.mxu1  ;;  %v4343_v63 = vpop.f32.mrf.mxu3 }
 0x20b   :  { %v1452_v55 = vpop.f32.mrf.mxu0  ;;  %5040 = vst [vmem:[#allocation41_spill] sm:$0xff] %v4343_v63  ;;  %v1588_v22 = vadd.f32 %v4279_v20, %v1587_v59  ;;  %3293 = vmatmul.msk.bf16.gmra.mxu2 %vm932_vm1, %v3430_v10  ;;  %v1731_v10 = vadd.f32 %v4279_v20, %v4168_v19 }
 0x20c   :  { %v1453_v47 = vadd.f32 %v4279_v20, %v1452_v55 }
 0x20d   :  { %v2073_v55 = vmax.f32 %v1588_v22, 0.0 }
 0x20e   :  { %v2019_v34 = vmax.f32 %v1453_v47, 0.0  ;;  %2448 = vmatpush.bf16.msrb.mxu3 %v2255_v39  ;;  %v1561_v39 = vadd.f32 %v4279_v20, %v4124_v52  ;;  %v1733_v52 = vadd.f32 %v4279_v20, %v4183_v51  ;;  %v2130_v51 = vmax.f32 %v1731_v10, 0.0 }
 0x210   :  { %v4345_v62 = vpack.c.bf16 %v2019_v34, %v2018_v4  ;;  %v4367_v37 = vpop.f32.mrf.mxu2  ;;  %v2065_v4 = vmax.f32 %v1568_v6, 0.0  ;;  %v4377_v34 = vpack.c.bf16 %v2073_v55, %v2072_v8  ;;  %v2131_v6 = vmax.f32 %v1733_v52, 0.0 }
 0x211   :  { %3324 = vmatmul.msk.bf16.gmra.mxu3 %vm932_vm1, %v3461_v32  ;;  %5041 = vst [vmem:[#allocation42_spill] sm:$0xff] %v4367_v37 }
 0x212   :  { %2449 = vmatpush.bf16.msrb.mxu3 %v4148_v36  ;;  %v1566_v36 = vadd.f32 %v4279_v20, %v4166_v45  ;;  %v1590_v5 = vpop.f32.mrf.mxu1  ;;  %v4369_v47 = vpop.f32.mrf.mxu3  ;;  %v1563_v45 = vadd.f32 %v4279_v20, %v4141_v9 }
 0x213   :  { %v1455_v41 = vpop.f32.mrf.mxu0  ;;  %5042 = vst [vmem:[#allocation43_spill] sm:$0xff] %v4369_v47 }
 0x214   :  { %v2064_v1 = vmax.f32 %v1566_v36, 0.0  ;;  %v1456_v60 = vadd.f32 %v4279_v20, %v1455_v41  ;;  %v2063_v32 = vmax.f32 %v1563_v45, 0.0  ;;  %v3398_v41 = vld [vmem:[%s4996_s0 + $0x1e8] sm:$0xff] }
 0x215   :  { %v3462_v45 = vld [vmem:[%s4996_s0 + $0x3e8] sm:$0xff] }
 0x216   :  { %3233 = vmatmul.msk.bf16.gmra.mxu0 %vm932_vm1, %v3370_v33  ;;  %2450 = vmatpush.bf16.msrb.mxu3 %v4106_v18  ;;  %v2062_v33 = vmax.f32 %v1561_v39, 0.0  ;;  %v2282_v9 = vpack.c.bf16 %v2065_v4, %v2064_v1  ;;  %v2020_v26 = vmax.f32 %v1456_v60, 0.0  ;;  %v3431_v39 = vld [vmem:[%s4996_s0 + $0x2f0] sm:$0xff]  ;;  %v1591_v4 = vadd.f32 %v4279_v20, %v1590_v5 }
 0x217   :  { %3261 = vmatmul.msk.bf16.gmra.mxu1 %vm932_vm1, %v3398_v41 }
 0x218   :  { %v4388_v36 = vpop.f32.mrf.mxu2  ;;  %v2281_v55 = vpack.c.bf16 %v2063_v32, %v2062_v33  ;;  %v2074_v52 = vmax.f32 %v1591_v4, 0.0 }
 0x219   :  { %5043 = vst [vmem:[#allocation44_spill] sm:$0xff] %v4388_v36 }
 0x21a   :  { %2451 = vmatpush.bf16.msrb.mxu3 %v4068_v25  ;;  %v1592_v22 = vpop.f32.mrf.mxu1  ;;  %v4391_v19 = vpop.f32.mrf.mxu3 }
 0x21b   :  { %v1457_v18 = vpop.f32.mrf.mxu0  ;;  %5044 = vst [vmem:[#allocation45_spill] sm:$0xff] %v4391_v19  ;;  %v1593_v60 = vadd.f32 %v4279_v20, %v1592_v22  ;;  %3294 = vmatmul.msk.bf16.gmra.mxu2 %vm932_vm1, %v3431_v39  ;;  %v1738_v22 = vadd.f32 %v4279_v20, %v4217_v29  ;;  %v3432_v29 = vld [vmem:[%s4996_s0 + $0x2f8] sm:$0xff] }
 0x21c   :  { %v1458_v59 = vadd.f32 %v4279_v20, %v1457_v18  ;;  %v4408_v18 = vpack.c.bf16 %v2131_v6, %v2130_v51 }
 0x21d   :  { %v2075_v33 = vmax.f32 %v1593_v60, 0.0 }
 0x21e   :  { %v2021_v25 = vmax.f32 %v1458_v59, 0.0  ;;  %2452 = vmatpush.bf16.msrb.mxu3 %v4028_v40  ;;  %v3371_v40 = vld [vmem:[%s4996_s0 + $0x110] sm:$0xff]  ;;  %5045 = vst [vmem:[#allocation46_spill] sm:$0xff] %v4408_v18 }
 0x21f   :  { %v4418_v41 = vpack.c.bf16 %v2075_v33, %v2074_v52 }
 0x220   :  { %v4393_v8 = vpack.c.bf16 %v2021_v25, %v2020_v26  ;;  %v4411_v10 = vpop.f32.mrf.mxu2  ;;  %v1736_v25 = vadd.f32 %v4279_v20, %v4204_v50  ;;  %v2133_v50 = vmax.f32 %v1738_v22, 0.0 }
 0x221   :  { %3325 = vmatmul.msk.bf16.gmra.mxu3 %vm932_vm1, %v3462_v45  ;;  %5046 = vst [vmem:[#allocation47_spill] sm:$0xff] %v4411_v10 }
 0x222   :  { %2484 = vmatpush.bf16.msra.mxu3 %v2282_v9  ;;  %v1595_v59 = vpop.f32.mrf.mxu1  ;;  %v4414_v32 = vpop.f32.mrf.mxu3 }
 0x223   :  { %v1460_v1 = vpop.f32.mrf.mxu0  ;;  %5047 = vst [vmem:[#allocation48_spill] sm:$0xff] %v4414_v32  ;;  %v1596_v60 = vadd.f32 %v4279_v20, %v1595_v59 }
 0x224   :  { %v1461_v5 = vadd.f32 %v4279_v20, %v1460_v1  ;;  %v3372_v1 = vld [vmem:[%s4996_s0 + $0x118] sm:$0xff] }
 0x226   :  { %2485 = vmatpush.bf16.msra.mxu3 %v2281_v55  ;;  %3234 = vmatmul.msk.bf16.gmra.mxu0 %vm932_vm1, %v3371_v40  ;;  %v2022_v51 = vmax.f32 %v1461_v5, 0.0  ;;  %v2132_v40 = vmax.f32 %v1736_v25, 0.0 }
 0x228   :  { %v4428_v39 = vpop.f32.mrf.mxu2  ;;  %v4450_v33 = vpack.c.bf16 %v2133_v50, %v2132_v40  ;;  %v3400_v40 = vld [vmem:[%s4996_s0 + $0x1f8] sm:$0xff] }
 0x229   :  { %5048 = vst [vmem:[#allocation49_spill] sm:$0xff] %v4428_v39 }
 0x22a   :  { %2486 = vmatpush.bf16.msra.mxu3 %v4131_v58  ;;  %v3399_v58 = vld [vmem:[%s4996_s0 + $0x1f0] sm:$0xff]  ;;  %v1597_v55 = vpop.f32.mrf.mxu1  ;;  %5050 = vst [vmem:[#allocation51_spill] sm:$0xff] %v4450_v33 }
 0x22b   :  { %v1462_v9 = vpop.f32.mrf.mxu0  ;;  %3262 = vmatmul.msk.bf16.gmra.mxu1 %vm932_vm1, %v3399_v58  ;;  %v1598_v52 = vadd.f32 %v4279_v20, %v1597_v55  ;;  %3295 = vmatmul.msk.bf16.gmra.mxu2 %vm932_vm1, %v3432_v29  ;;  %v1743_v55 = vadd.f32 %v4279_v20, %v4251_v43  ;;  %v3433_v43 = vld [vmem:[%s4996_s0 + $0x300] sm:$0xff] }
 0x22c   :  { %v1463_v26 = vadd.f32 %v4279_v20, %v1462_v9 }
 0x22d   :  { %v2077_v25 = vmax.f32 %v1598_v52, 0.0  ;;  %v3373_v52 = vld [vmem:[%s4996_s0 + $0x120] sm:$0xff] }
 0x22e   :  { %2487 = vmatpush.bf16.msra.mxu3 %v4091_v56  ;;  %v2023_v6 = vmax.f32 %v1463_v26, 0.0  ;;  %v4432_v56 = vpop.f32.mrf.mxu3  ;;  %v2076_v26 = vmax.f32 %v1596_v60, 0.0 }
 0x22f   :  { %5049 = vst [vmem:[#allocation50_spill] sm:$0xff] %v4432_v56 }
 0x230   :  { %v4434_v45 = vpack.c.bf16 %v2023_v6, %v2022_v51  ;;  %v4455_v9 = vpop.f32.mrf.mxu2  ;;  %v4461_v58 = vpack.c.bf16 %v2077_v25, %v2076_v26  ;;  %v1741_v6 = vadd.f32 %v4279_v20, %v4238_v11  ;;  %v3464_v26 = vld [vmem:[%s4996_s0 + $0x3f8] sm:$0xff] }
 0x231   :  { %5051 = vst [vmem:[#allocation52_spill] sm:$0xff] %v4455_v9 }
 0x232   :  { %2488 = vmatpush.bf16.msra.mxu3 %v4052_v16  ;;  %v3463_v16 = vld [vmem:[%s4996_s0 + $0x3f0] sm:$0xff]  ;;  %v4453_v5 = vpop.f32.mrf.mxu1 }
 0x233   :  { %v1465_v4 = vpop.f32.mrf.mxu0  ;;  %3326 = vmatmul.msk.bf16.gmra.mxu3 %vm932_vm1, %v3463_v16  ;;  %v2134_v16 = vmax.f32 %v1741_v6, 0.0 }
 0x236   :  { %2489 = vmatpush.bf16.msra.mxu3 %v4017_v23  ;;  %3235 = vmatmul.msk.bf16.gmra.mxu0 %vm932_vm1, %v3372_v1  ;;  %v4458_v59 = vpop.f32.mrf.mxu3  ;;  %v1466_v23 = vadd.f32 %v4279_v20, %v1465_v4  ;;  %v2135_v4 = vmax.f32 %v1743_v55, 0.0 }
 0x237   :  { %5052 = vst [vmem:[#allocation53_spill] sm:$0xff] %v4458_v59 }
 0x238   :  { %v4471_v29 = vpop.f32.mrf.mxu2 }
 0x239   :  { %5053 = vst [vmem:[#allocation54_spill] sm:$0xff] %v4471_v29 }
 0x23a   :  { %2490 = vmatpush.bf16.msra.mxu3 %v3966_v42  ;;  %v2024_v42 = vmax.f32 %v1466_v23, 0.0  ;;  %v4476_v60 = vpop.f32.mrf.mxu1  ;;  %v4493_v23 = vpack.c.bf16 %v2135_v4, %v2134_v16  ;;  %v3374_v4 = vld [vmem:[%s4996_s0 + $0x128] sm:$0xff] }
 0x23b   :  { %v1467_v22 = vpop.f32.mrf.mxu0  ;;  %3263 = vmatmul.msk.bf16.gmra.mxu1 %vm932_vm1, %v3400_v40  ;;  %3296 = vmatmul.msk.bf16.gmra.mxu2 %vm932_vm1, %v3433_v43  ;;  %v3401_v40 = vld [vmem:[%s4996_s0 + $0x200] sm:$0xff] }
 0x23c   :  { %v1468_v51 = vadd.f32 %v4279_v20, %v1467_v22  ;;  %5055 = vst [vmem:[#allocation56_spill] sm:$0xff] %v4493_v23 }
 0x23e   :  { %v2025_v50 = vmax.f32 %v1468_v51, 0.0  ;;  %v4474_v1 = vpop.f32.mrf.mxu3 }
 0x23f   :  { %5054 = vst [vmem:[#allocation55_spill] sm:$0xff] %v4474_v1 }
 0x240   :  { %v4478_v11 = vpack.c.bf16 %v2025_v50, %v2024_v42  ;;  %v4496_v22 = vpop.f32.mrf.mxu2 }
 0x241   :  { %5056 = vst [vmem:[#allocation57_spill] sm:$0xff] %v4496_v22  ;;  %v3403_v22 = vld [vmem:[%s4996_s0 + $0x210] sm:$0xff] }
 0x242   :  { %v4500_v6 = vpop.f32.mrf.mxu1 }
 0x243   :  { %v4489_v25 = vpop.f32.mrf.mxu0  ;;  %3327 = vmatmul.msk.bf16.gmra.mxu3 %vm932_vm1, %v3464_v26 }
 0x246   :  { %3236 = vmatmul.msk.bf16.gmra.mxu0 %vm932_vm1, %v3373_v52  ;;  %v4498_v51 = vpop.f32.mrf.mxu3 }
 0x247   :  { %5057 = vst [vmem:[#allocation58_spill] sm:$0xff] %v4498_v51 }
 0x248   :  { %v4507_v42 = vpop.f32.mrf.mxu2 }
 0x249   :  { %5058 = vst [vmem:[#allocation59_spill] sm:$0xff] %v4507_v42 }
 0x24a   :  { %v4512_v16 = vpop.f32.mrf.mxu1 }
 0x24b   :  { %v4502_v55 = vpop.f32.mrf.mxu0  ;;  %3264 = vmatmul.msk.bf16.gmra.mxu1 %vm932_vm1, %v3401_v40  ;;  %v3402_v40 = vld [vmem:[%s4996_s0 + $0x208] sm:$0xff] }
 0x24e   :  { %v4510_v50 = vpop.f32.mrf.mxu3 }
 0x24f   :  { %5059 = vst [vmem:[#allocation60_spill] sm:$0xff] %v4510_v50 }
 0x250   :  { %v4518_v52 = vpop.f32.mrf.mxu2 }
 0x251   :  { %5060 = vst [vmem:[#allocation61_spill] sm:$0xff] %v4518_v52 }
 0x252   :  { %v1610_v18 = vpop.f32.mrf.mxu1 }
 0x253   :  { %v1475_v43 = vpop.f32.mrf.mxu0  ;;  %v1611_v47 = vadd.f32 %v4279_v20, %v1610_v18 }
 0x254   :  { %v1476_v9 = vadd.f32 %v4279_v20, %v1475_v43 }
 0x255   :  { %v2082_v1 = vmax.f32 %v1611_v47, 0.0  ;;  %v3376_v47 = vld [vmem:[%s4996_s0 + $0x138] sm:$0xff] }
 0x256   :  { %3237 = vmatmul.msk.bf16.gmra.mxu0 %vm932_vm1, %v3374_v4  ;;  %v4520_v26 = vpop.f32.mrf.mxu3  ;;  %v3375_v4 = vld [vmem:[%s4996_s0 + $0x130] sm:$0xff] }
 0x258   :  { %v4525_v63 = vpop.f32.mrf.mxu2 }
 0x259   :  { %5061 = vst [vmem:[#allocation62_spill] sm:$0xff] %v4525_v63 }
 0x25a   :  { %v1612_v23 = vpop.f32.mrf.mxu1 }
 0x25b   :  { %v1477_v33 = vpop.f32.mrf.mxu0  ;;  %3265 = vmatmul.msk.bf16.gmra.mxu1 %vm932_vm1, %v3402_v40  ;;  %v1613_v56 = vadd.f32 %v4279_v20, %v1612_v23 }
 0x25d   :  { %v2083_v59 = vmax.f32 %v1613_v56, 0.0 }
 0x25e   :  { %v4528_v12 = vpop.f32.mrf.mxu3 }
 0x25f   :  { %v4542_v42 = vpack.c.bf16 %v2083_v59, %v2082_v1 }
 0x260   :  { %v4536_v32 = vpop.f32.mrf.mxu2 }
 0x261   :  { %5062 = vst [vmem:[#allocation63_spill] sm:$0xff] %v4536_v32 }
 0x262   :  { %v4540_v40 = vpop.f32.mrf.mxu1  ;;  %5064 = vst [vmem:[#allocation65_spill] sm:$0xff] %v4542_v42 }
 0x263   :  { %v1480_v19 = vpop.f32.mrf.mxu0  ;;  %5063 = vst [vmem:[#allocation64_spill] sm:$0xff] %v4540_v40 }
 0x264   :  { %v1481_v32 = vadd.f32 %v4279_v20, %v1480_v19 }
 0x266   :  { %3238 = vmatmul.msk.bf16.gmra.mxu0 %vm932_vm1, %v3375_v4  ;;  %v4538_v50 = vpop.f32.mrf.mxu3 }
 0x268   :  { %v4547_v18 = vpop.f32.mrf.mxu2 }
 0x269   :  { %5065 = vst [vmem:[#allocation66_spill] sm:$0xff] %v4547_v18 }
 0x26a   :  { %v4552_v4 = vpop.f32.mrf.mxu1 }
 0x26b   :  { %v1482_v51 = vpop.f32.mrf.mxu0  ;;  %3266 = vmatmul.msk.bf16.gmra.mxu1 %vm932_vm1, %v3403_v22  ;;  %5066 = vst [vmem:[#allocation67_spill] sm:$0xff] %v4552_v4  ;;  %v4568_v22 = vld [vmem:[%s4997_s1] sm:$0xff]  ;;  %v2030_v4 = vmax.f32 %v1481_v32, 0.0 }
 0x26c   :  { %v2371_v13 = vunpack.c.l.b16 %v4568_v22  ;;  %v1483_v42 = vadd.f32 %v4279_v20, %v1482_v51 }
 0x26e   :  { %v4550_v23 = vpop.f32.mrf.mxu3  ;;  %v2387_v18 = vpack.c.b16 %v2371_v13, %v2371_v13  ;;  %v3377_v13 = vld [vmem:[%s4996_s0 + $0x140] sm:$0xff] }
 0x270   :  { %v4558_v59 = vpop.f32.mrf.mxu2 }
 0x271   :  { %5067 = vst [vmem:[#allocation68_spill] sm:$0xff] %v4558_v59  ;;  %v2031_v59 = vmax.f32 %v1483_v42, 0.0  ;;  %v2028_v42 = vmax.f32 %v1476_v9, 0.0 }
 0x272   :  { %v4560_v1 = vpop.f32.mrf.mxu1 }
 0x273   :  { %v1485_v56 = vpop.f32.mrf.mxu0 }
 0x274   :  { %v1486_v52 = vadd.f32 %v4279_v20, %v1485_v56  ;;  %v1478_v56 = vadd.f32 %v4279_v20, %v1477_v33  ;;  %v1473_v33 = vadd.f32 %v4279_v20, %v4502_v55 }
 0x276   :  { %3239 = vmatmul.msk.bf16.gmra.mxu0 %vm932_vm1, %v3376_v47  ;;  %v4562_v63 = vpop.f32.mrf.mxu3  ;;  %v2032_v36 = vmax.f32 %v1486_v52, 0.0  ;;  %v2029_v51 = vmax.f32 %v1478_v56, 0.0  ;;  %v2027_v32 = vmax.f32 %v1473_v33, 0.0 }
 0x278   :  { %v4577_v29 = vpop.f32.mrf.mxu2 }
 0x279   :  { %5068 = vst [vmem:[#allocation69_spill] sm:$0xff] %v4577_v29 }
 0x27a   :  { %v4575_v10 = vpop.f32.mrf.mxu1 }
 0x27b   :  { %v1487_v3 = vpop.f32.mrf.mxu0  ;;  %2427 = vmatmul.bf16.vlgmr.msrb.gmra.mxu1 %v2387_v18 }
 0x27c   :  { %v1488_v47 = vadd.f32 %v4279_v20, %v1487_v3 }
 0x27e   :  { %v2033_v37 = vmax.f32 %v1488_v47, 0.0  ;;  %v4583_v3 = vpop.f32.mrf.mxu3 }
 0x280   :  { %v2266_v39 = vpack.c.bf16 %v2033_v37, %v2032_v36  ;;  %v2265_v37 = vpack.c.bf16 %v2031_v59, %v2030_v4  ;;  %v1471_v36 = vadd.f32 %v4279_v20, %v4489_v25  ;;  %v4593_v29 = vpop.f32.mrf.mxu2 }
 0x281   :  { %5069 = vst [vmem:[#allocation70_spill] sm:$0xff] %v4593_v29 }
 0x282   :  { %2458 = vmatpush.bf16.msra.mxu1 %v2266_v39  ;;  %v2264_v39 = vpack.c.bf16 %v2029_v51, %v2028_v42  ;;  %v4590_v43 = vpop.f32.mrf.mxu1  ;;  %v2026_v52 = vmax.f32 %v1471_v36, 0.0  ;;  %v1608_v51 = vadd.f32 %v4279_v20, %v4512_v16  ;;  %v4615_v42 = vld [vmem:[%s4997_s1 + $0x8] sm:$0xff] }
 0x283   :  { %v1490_v19 = vpop.f32.mrf.mxu0 }
 0x284   :  { %v1491_v18 = vadd.f32 %v4279_v20, %v1490_v19  ;;  %v2263_v4 = vpack.c.bf16 %v2027_v32, %v2026_v52  ;;  %v1606_v19 = vadd.f32 %v4279_v20, %v4500_v6  ;;  %v1603_v6 = vadd.f32 %v4279_v20, %v4476_v60 }
 0x285   :  { %v2374_v52 = vunpack.c.h.b16 %v4615_v42 }
 0x286   :  { %3240 = vmatmul.msk.bf16.gmra.mxu0 %vm932_vm1, %v3377_v13  ;;  %2459 = vmatpush.bf16.msra.mxu1 %v2265_v37  ;;  %v4596_v59 = vpop.f32.mrf.mxu3  ;;  %v2034_v9 = vmax.f32 %v1491_v18, 0.0  ;;  %v2080_v16 = vmax.f32 %v1606_v19, 0.0 }
 0x288   :  { %v4607_v37 = vpop.f32.mrf.mxu2 }
 0x289   :  { %5070 = vst [vmem:[#allocation71_spill] sm:$0xff] %v4607_v37 }
 0x28a   :  { %2460 = vmatpush.bf16.msra.mxu1 %v2264_v39  ;;  %v4600_v13 = vpop.f32.mrf.mxu1  ;;  %v2081_v39 = vmax.f32 %v1608_v51, 0.0 }
 0x28b   :  { %v1492_v47 = vpop.f32.mrf.mxu0 }
 0x28c   :  { %v1493_v55 = vadd.f32 %v4279_v20, %v1492_v47 }
 0x28e   :  { %v2035_v25 = vmax.f32 %v1493_v55, 0.0  ;;  %2461 = vmatpush.bf16.msra.mxu1 %v2263_v4  ;;  %v4610_v36 = vpop.f32.mrf.mxu3  ;;  %v2079_v4 = vmax.f32 %v1603_v6, 0.0 }
 0x290   :  { %v4598_v56 = vpack.c.bf16 %v2035_v25, %v2034_v9  ;;  %v2290_v9 = vpack.c.bf16 %v2081_v39, %v2080_v16  ;;  %v4628_v60 = vpop.f32.mrf.mxu2 }
 0x291   :  { %5071 = vst [vmem:[#allocation72_spill] sm:$0xff] %v4628_v60 }
 0x292   :  { %2462 = vmatpush.bf16.msra.mxu1 %v4478_v11  ;;  %v1601_v11 = vadd.f32 %v4279_v20, %v4453_v5  ;;  %v4619_v32 = vpop.f32.mrf.mxu1  ;;  %v2390_v5 = vpack.c.b16 %v2374_v52, %v2374_v52 }
 0x293   :  { %v1495_v33 = vpop.f32.mrf.mxu0 }
 0x294   :  { %v2078_v55 = vmax.f32 %v1601_v11, 0.0 }
 0x296   :  { %2463 = vmatpush.bf16.msra.mxu1 %v4434_v45  ;;  %v1496_v45 = vadd.f32 %v4279_v20, %v1495_v33  ;;  %v4634_v33 = vpop.f32.mrf.mxu3 }
 0x298   :  { %v2036_v25 = vmax.f32 %v1496_v45, 0.0  ;;  %v4637_v6 = vpop.f32.mrf.mxu2 }
 0x299   :  { %5072 = vst [vmem:[#allocation73_spill] sm:$0xff] %v4637_v6 }
 0x29a   :  { %2464 = vmatpush.bf16.msra.mxu1 %v4393_v8  ;;  %v4632_v51 = vpop.f32.mrf.mxu1  ;;  %v2289_v8 = vpack.c.bf16 %v2079_v4, %v2078_v55 }
 0x29b   :  { %v1497_v18 = vpop.f32.mrf.mxu0 }
 0x29c   :  { %v1498_v47 = vadd.f32 %v4279_v20, %v1497_v18 }
 0x29e   :  { %v2037_v37 = vmax.f32 %v1498_v47, 0.0  ;;  %2465 = vmatpush.bf16.msra.mxu1 %v4345_v62  ;;  %v4640_v16 = vpop.f32.mrf.mxu3 }
 0x2a0   :  { %v4630_v19 = vpack.c.bf16 %v2037_v37, %v2036_v25 }
 0x2a1   :  { %2466 = vmatmul.bf16.vlgmr.msra.gmra.mxu1 %v2390_v5 }
 0x2a2   :  { %2497 = vmatpush.bf16.msrb.mxu1 %v2290_v9  ;;  %v1635_v11 = vpop.f32.mrf.mxu1 }
 0x2a3   :  { %v1500_v18 = vpop.f32.mrf.mxu0  ;;  %v1636_v52 = vadd.f32 %v4279_v20, %v1635_v11 }
 0x2a4   :  { %v1501_v62 = vadd.f32 %v4279_v20, %v1500_v18 }
 0x2a5   :  { %v2092_v4 = vmax.f32 %v1636_v52, 0.0 }
 0x2a6   :  { %2498 = vmatpush.bf16.msrb.mxu1 %v2289_v8  ;;  %v2038_v45 = vmax.f32 %v1501_v62, 0.0  ;;  %v4650_v8 = vpop.f32.mrf.mxu2  ;;  %v4657_v18 = vpop.f32.mrf.mxu3 }
 0x2aa   :  { %2499 = vmatpush.bf16.msrb.mxu1 %v4461_v58  ;;  %v1637_v58 = vpop.f32.mrf.mxu1 }
 0x2ab   :  { %v1502_v39 = vpop.f32.mrf.mxu0  ;;  %v1638_v9 = vadd.f32 %v4279_v20, %v1637_v58 }
 0x2ac   :  { %v1503_v37 = vadd.f32 %v4279_v20, %v1502_v39 }
 0x2ad   :  { %v2093_v25 = vmax.f32 %v1638_v9, 0.0 }
 0x2ae   :  { %2500 = vmatpush.bf16.msrb.mxu1 %v4418_v41  ;;  %v2039_v47 = vmax.f32 %v1503_v37, 0.0  ;;  %v4655_v41 = vld [vmem:[%s4997_s1 + $0x18] sm:$0xff]  ;;  %v4667_v52 = vpop.f32.mrf.mxu2 }
 0x2af   :  { %5073 = vst [vmem:[#allocation74_spill] sm:$0xff] %v4655_v41  ;;  %v2377_v11 = vunpack.c.l.b16 %v4655_v41 }
 0x2b0   :  { %v4646_v55 = vpack.c.bf16 %v2039_v47, %v2038_v45 }
 0x2b1   :  { %v2393_v39 = vpack.c.b16 %v2377_v11, %v2377_v11  ;;  %v1846_v11 = vadd.f32 %v4279_v20, %v3867_v54  ;;  %v1843_v54 = vadd.f32 %v4279_v20, %v3847_v46  ;;  %v1831_v46 = vadd.f32 %v4279_v20, %v3779_v53 }
 0x2b2   :  { %2501 = vmatpush.bf16.msrb.mxu1 %v4377_v34  ;;  %v4659_v34 = vpack.c.bf16 %v2093_v25, %v2092_v4  ;;  %v4669_v58 = vpop.f32.mrf.mxu1  ;;  %v4671_v4 = vpop.f32.mrf.mxu3  ;;  %v1828_v53 = vadd.f32 %v4279_v20, %v3759_v57 }
 0x2b3   :  { %v1505_v5 = vpop.f32.mrf.mxu0  ;;  %v2175_v41 = vmax.f32 %v1843_v54, 0.0 }
 0x2b4   :  { %v1506_v62 = vadd.f32 %v4279_v20, %v1505_v5 }
 0x2b6   :  { %2502 = vmatpush.bf16.msrb.mxu1 %v4334_v21  ;;  %v2040_v45 = vmax.f32 %v1506_v62, 0.0  ;;  %v1841_v62 = vadd.f32 %v4279_v20, %v3837_v35  ;;  %v1838_v35 = vadd.f32 %v4279_v20, %v3819_v27 }
 0x2ba   :  { %2503 = vmatpush.bf16.msrb.mxu1 %v4282_v31  ;;  %v4684_v5 = vpop.f32.mrf.mxu3 }
 0x2bb   :  { %v1507_v21 = vpop.f32.mrf.mxu0 }
 0x2bc   :  { %v1508_v37 = vadd.f32 %v4279_v20, %v1507_v21 }
 0x2be   :  { %2504 = vmatpush.bf16.msrb.mxu1 %v4242_v30  ;;  %v2041_v47 = vmax.f32 %v1508_v37, 0.0  ;;  %v4679_v30 = vpop.f32.mrf.mxu2 }
 0x2c0   :  { %v4673_v31 = vpack.c.bf16 %v2041_v47, %v2040_v45  ;;  %v1836_v45 = vadd.f32 %v4279_v20, %v3809_v15  ;;  %v2174_v47 = vmax.f32 %v1841_v62, 0.0 }
 0x2c1   :  { %2505 = vmatmul.bf16.vlgmr.msrb.gmra.mxu1 %v2393_v39 }
 0x2c2   :  { %2536 = vmatpush.bf16.msra.mxu1 %v4332_v17  ;;  %v4682_v17 = vpop.f32.mrf.mxu1  ;;  %v2337_v15 = vpack.c.bf16 %v2175_v41, %v2174_v47  ;;  %v2372_v41 = vunpack.c.h.b16 %v4568_v22 }
 0x2c3   :  { %v4676_v9 = vpop.f32.mrf.mxu0 }
 0x2c6   :  { %2537 = vmatpush.bf16.msra.mxu1 %v4320_v38  ;;  %v1848_v38 = vadd.f32 %v4279_v20, %v3881_v0  ;;  %v2176_v0 = vmax.f32 %v1846_v11, 0.0  ;;  %v1833_v11 = vadd.f32 %v4279_v20, %v3791_v7 }
 0x2c8   :  { %v2177_v21 = vmax.f32 %v1848_v38, 0.0  ;;  %v2173_v38 = vmax.f32 %v1838_v35, 0.0  ;;  %v2171_v54 = vmax.f32 %v1833_v11, 0.0 }
 0x2ca   :  { %2538 = vmatpush.bf16.msra.mxu1 %v4269_v49  ;;  %v4694_v49 = vpop.f32.mrf.mxu2  ;;  %v4703_v39 = vpop.f32.mrf.mxu1  ;;  %v2338_v29 = vpack.c.bf16 %v2177_v21, %v2176_v0  ;;  %v1821_v0 = vadd.f32 %v4279_v20, %v3717_v14 }
 0x2cb   :  { %v4686_v25 = vpop.f32.mrf.mxu0 }
 0x2ce   :  { %2539 = vmatpush.bf16.msra.mxu1 %v4235_v28  ;;  %v4699_v28 = vld [vmem:[%s4997_s1 + $0x20] sm:$0xff] }
 0x2cf   :  { %5074 = vst [vmem:[#allocation75_spill] sm:$0xff] %v4699_v28  ;;  %v2380_v37 = vunpack.c.h.b16 %v4699_v28 }
 0x2d1   :  { %v2396_v6 = vpack.c.b16 %v2380_v37, %v2380_v37 }
 0x2d2   :  { %2540 = vmatpush.bf16.msra.mxu1 %v4201_v61  ;;  %v4705_v61 = vpop.f32.mrf.mxu3  ;;  %v1810_v40 = vpop.f32.mrf.mxu2 }
 0x2d3   :  { %v4724_v27 = vpop.f32.mrf.mxu1 }
 0x2d6   :  { %2541 = vmatpush.bf16.msra.mxu1 %v4163_v24  ;;  %v4709_v24 = vpop.f32.mrf.mxu0 }
 0x2da   :  { %2542 = vmatpush.bf16.msra.mxu1 %v4121_v48  ;;  %v2172_v48 = vmax.f32 %v1836_v45, 0.0  ;;  %v1965_v62 = vpop.f32.mrf.mxu3  ;;  %v2169_v45 = vmax.f32 %v1828_v53, 0.0  ;;  %v1812_v57 = vpop.f32.mrf.mxu2 }
 0x2dc   :  { %v2336_v7 = vpack.c.bf16 %v2173_v38, %v2172_v48  ;;  %v4738_v48 = vpop.f32.mrf.mxu1  ;;  %v5077_v38 = vld [vmem:[#allocation7_spill] sm:$0xff] }
 0x2de   :  { %2543 = vmatpush.bf16.msra.mxu1 %v4083_v2  ;;  %v4722_v60 = vpop.f32.mrf.mxu0  ;;  %v1826_v2 = vadd.f32 %v4279_v20, %v3749_v44  ;;  %v2373_v44 = vunpack.c.l.b16 %v4615_v42  ;;  %v1811_v42 = vadd.f32 %v4279_v20, %v1810_v40  ;;  %v1963_v40 = vadd.f32 %v4279_v20, %v4705_v61 }
 0x2df   :  { %v1953_v61 = vadd.f32 %v4279_v20, %v4640_v16 }
 0x2e0   :  { %v2168_v37 = vmax.f32 %v1826_v2, 0.0  ;;  %v2389_v14 = vpack.c.b16 %v2373_v44, %v2373_v44  ;;  %v2166_v2 = vmax.f32 %v1821_v0, 0.0  ;;  %v2162_v28 = vmax.f32 %v1811_v42, 0.0 }
 0x2e1   :  { %2544 = vmatmul.bf16.vlgmr.msra.gmra.mxu1 %v2396_v6  ;;  %v5075_v6 = vld [vmem:[#allocation8_spill] sm:$0xff] }
 0x2e2   :  { %2575 = vmatpush.bf16.msrb.mxu1 %v2338_v29  ;;  %v2170_v29 = vmax.f32 %v1831_v46, 0.0  ;;  %v1823_v21 = vadd.f32 %v4279_v20, %v5075_v6  ;;  %v5076_v46 = vld [vmem:[#allocation6_spill] sm:$0xff]  ;;  %v1967_v22 = vpop.f32.mrf.mxu3  ;;  %v2334_v6 = vpack.c.bf16 %v2169_v45, %v2168_v37  ;;  %2453 = vmatmul.bf16.vlgmr.msrb.gmra.mxu3 %v2389_v14  ;;  %v1961_v37 = vadd.f32 %v4279_v20, %v4684_v5 }
 0x2e3   :  { %v1816_v11 = vadd.f32 %v4279_v20, %v5076_v46  ;;  %v1956_v14 = vadd.f32 %v4279_v20, %v4657_v18  ;;  %v1951_v5 = vadd.f32 %v4279_v20, %v4634_v33  ;;  %v1946_v18 = vadd.f32 %v4279_v20, %v4596_v59 }
 0x2e4   :  { %v2335_v47 = vpack.c.bf16 %v2171_v54, %v2170_v29  ;;  %v2167_v53 = vmax.f32 %v1823_v21, 0.0  ;;  %v1966_v29 = vadd.f32 %v4279_v20, %v1965_v62  ;;  %v1813_v54 = vadd.f32 %v4279_v20, %v1812_v57  ;;  %v4750_v45 = vpop.f32.mrf.mxu1 }
 0x2e6   :  { %2576 = vmatpush.bf16.msrb.mxu1 %v2337_v15  ;;  %v1520_v35 = vpop.f32.mrf.mxu0  ;;  %v2388_v15 = vpack.c.b16 %v2372_v41, %v2372_v41  ;;  %v1968_v41 = vadd.f32 %v4279_v20, %v1967_v22  ;;  %v2333_v46 = vpack.c.bf16 %v2167_v53, %v2166_v2  ;;  %v2163_v0 = vmax.f32 %v1813_v54, 0.0 }
 0x2e7   :  { %v1958_v22 = vadd.f32 %v4279_v20, %v4671_v4  ;;  %v2223_v2 = vmax.f32 %v1963_v40, 0.0  ;;  %v1948_v4 = vadd.f32 %v4279_v20, %v4610_v36  ;;  %v2219_v54 = vmax.f32 %v1953_v61, 0.0 }
 0x2e8   :  { %2440 = vmatmul.bf16.vlgmr.msrb.gmra.mxu2 %v2388_v15  ;;  %v2225_v21 = vmax.f32 %v1968_v41, 0.0  ;;  %v2331_v57 = vpack.c.bf16 %v2163_v0, %v2162_v28  ;;  %v2216_v0 = vmax.f32 %v1946_v18, 0.0  ;;  %v1941_v40 = vadd.f32 %v4279_v20, %v4562_v63 }
 0x2e9   :  { %v2221_v42 = vmax.f32 %v1958_v22, 0.0  ;;  %v2217_v59 = vmax.f32 %v1948_v4, 0.0  ;;  %v1513_v63 = vadd.f32 %v4279_v20, %v4686_v25 }
 0x2ea   :  { %2577 = vmatpush.bf16.msrb.mxu1 %v2336_v7  ;;  %v1818_v7 = vadd.f32 %v4279_v20, %v5077_v38  ;;  %v2224_v38 = vmax.f32 %v1966_v29, 0.0  ;;  %v2218_v29 = vmax.f32 %v1951_v5, 0.0  ;;  %v2214_v22 = vmax.f32 %v1941_v40, 0.0 }
 0x2eb   :  { %v2043_v18 = vmax.f32 %v1513_v63, 0.0 }
 0x2ec   :  { %v2165_v44 = vmax.f32 %v1818_v7, 0.0  ;;  %v2222_v7 = vmax.f32 %v1961_v37, 0.0 }
 0x2ee   :  { %2578 = vmatpush.bf16.msrb.mxu1 %v2335_v47  ;;  %v2164_v47 = vmax.f32 %v1816_v11, 0.0  ;;  %v1522_v15 = vpop.f32.mrf.mxu0  ;;  %v2362_v11 = vpack.c.bf16 %v2225_v21, %v2224_v38  ;;  %v2361_v28 = vpack.c.bf16 %v2223_v2, %v2222_v7  ;;  %v1521_v38 = vadd.f32 %v4279_v20, %v1520_v35 }
 0x2ef   :  { %v2359_v21 = vpack.c.bf16 %v2219_v54, %v2218_v29  ;;  %v1516_v35 = vadd.f32 %v4279_v20, %v4709_v24  ;;  %v2358_v2 = vpack.c.bf16 %v2217_v59, %v2216_v0  ;;  %v1938_v24 = vadd.f32 %v4279_v20, %v4550_v23 }
 0x2f0   :  { %v2332_v62 = vpack.c.bf16 %v2165_v44, %v2164_v47  ;;  %v4765_v47 = vpop.f32.mrf.mxu1  ;;  %v1523_v44 = vadd.f32 %v4279_v20, %v1522_v15 }
 0x2f1   :  { %v2213_v54 = vmax.f32 %v1938_v24, 0.0 }
 0x2f2   :  { %2579 = vmatpush.bf16.msrb.mxu1 %v2334_v6  ;;  %v2220_v6 = vmax.f32 %v1956_v14, 0.0  ;;  %v2047_v15 = vmax.f32 %v1523_v44, 0.0  ;;  %v2046_v14 = vmax.f32 %v1521_v38, 0.0  ;;  %v2229_v38 = vld [vmem:[%s4997_s1 + $0x10] sm:$0xff] }
 0x2f4   :  { %v2360_v33 = vpack.c.bf16 %v2221_v42, %v2220_v6  ;;  %v2273_v5 = vpack.c.bf16 %v2047_v15, %v2046_v14  ;;  %v1511_v6 = vadd.f32 %v4279_v20, %v4676_v9  ;;  %v2044_v42 = vmax.f32 %v1516_v35, 0.0 }
 0x2f6   :  { %2580 = vmatpush.bf16.msrb.mxu1 %v2333_v46  ;;  %v1525_v53 = vpop.f32.mrf.mxu0  ;;  %v2042_v23 = vmax.f32 %v1511_v6, 0.0 }
 0x2f7   :  { %v1526_v41 = vadd.f32 %v4279_v20, %v1525_v53 }
 0x2f8   :  { %v4780_v61 = vpop.f32.mrf.mxu1 }
 0x2f9   :  { %v2048_v37 = vmax.f32 %v1526_v41, 0.0  ;;  %v1931_v41 = vadd.f32 %v4279_v20, %v4520_v26 }
 0x2fa   :  { %2581 = vmatpush.bf16.msrb.mxu1 %v2332_v62  ;;  %v1943_v62 = vadd.f32 %v4279_v20, %v4583_v3 }
 0x2fb   :  { %v2210_v0 = vmax.f32 %v1931_v41, 0.0 }
 0x2fc   :  { %v2215_v7 = vmax.f32 %v1943_v62, 0.0  ;;  %v5078_v62 = vld [vmem:[#allocation20_spill] sm:$0xff] }
 0x2fe   :  { %2582 = vmatpush.bf16.msrb.mxu1 %v2331_v57  ;;  %v1527_v16 = vpop.f32.mrf.mxu0  ;;  %v1518_v57 = vadd.f32 %v4279_v20, %v4722_v60  ;;  %v1936_v60 = vadd.f32 %v4279_v20, %v4538_v50  ;;  %v1933_v50 = vadd.f32 %v4279_v20, %v4528_v12 }
 0x2ff   :  { %v1528_v46 = vadd.f32 %v4279_v20, %v1527_v16 }
 0x300   :  { %v2045_v3 = vmax.f32 %v1518_v57, 0.0  ;;  %v2212_v29 = vmax.f32 %v1936_v60, 0.0  ;;  %v2211_v59 = vmax.f32 %v1933_v50, 0.0 }
 0x301   :  { %v2049_v36 = vmax.f32 %v1528_v46, 0.0 }
 0x302   :  { %2614 = vmatpush.bf16.msra.mxu1 %v2362_v11  ;;  %v2272_v25 = vpack.c.bf16 %v2045_v3, %v2044_v42  ;;  %v2356_v46 = vpack.c.bf16 %v2213_v54, %v2212_v29  ;;  %v2355_v40 = vpack.c.bf16 %v2211_v59, %v2210_v0  ;;  %v5085_v0 = vld [vmem:[#allocation67_spill] sm:$0xff] }
 0x303   :  { %v2274_v11 = vpack.c.bf16 %v2049_v36, %v2048_v37  ;;  %v1660_v37 = vpop.f32.mrf.mxu1 }
 0x305   :  { %2471 = vmatpush.bf16.msra.mxu2 %v2274_v11  ;;  %v5079_v11 = vld [vmem:[#allocation18_spill] sm:$0xff] }
 0x306   :  { %2615 = vmatpush.bf16.msra.mxu1 %v2361_v28  ;;  %v1530_v53 = vpop.f32.mrf.mxu0  ;;  %v2357_v28 = vpack.c.bf16 %v2215_v7, %v2214_v22 }
 0x307   :  { %v1531_v4 = vadd.f32 %v4279_v20, %v1530_v53 }
 0x309   :  { %2472 = vmatpush.bf16.msra.mxu2 %v2273_v5  ;;  %v2050_v16 = vmax.f32 %v1531_v4, 0.0 }
 0x30a   :  { %2616 = vmatpush.bf16.msra.mxu1 %v2360_v33  ;;  %v2271_v33 = vpack.c.bf16 %v2043_v18, %v2042_v23 }
 0x30b   :  { %v1662_v35 = vpop.f32.mrf.mxu1 }
 0x30d   :  { %2473 = vmatpush.bf16.msra.mxu2 %v2272_v25 }
 0x30e   :  { %2617 = vmatpush.bf16.msra.mxu1 %v2359_v21  ;;  %v1532_v9 = vpop.f32.mrf.mxu0  ;;  %v2376_v21 = vunpack.c.h.b16 %v2229_v38 }
 0x30f   :  { %v1533_v44 = vadd.f32 %v4279_v20, %v1532_v9  ;;  %v4802_v20 = vld [vmem:[%s4999_s3] ss:$0 sm:$0xff] }
 0x310   :  { %v2392_v36 = vpack.c.b16 %v2376_v21, %v2376_v21  ;;  %v1646_v57 = vadd.f32 %v4802_v20, %v4703_v39  ;;  %v1648_v15 = vadd.f32 %v4802_v20, %v4724_v27  ;;  %v1643_v14 = vadd.f32 %v4802_v20, %v4682_v17  ;;  %v5080_v27 = vld [vmem:[#allocation15_spill] sm:$0xff]  ;;  %v5081_v17 = vld [vmem:[#allocation12_spill] sm:$0xff] }
 0x311   :  { %v2051_v26 = vmax.f32 %v1533_v44, 0.0  ;;  %2474 = vmatpush.bf16.msra.mxu2 %v2271_v33  ;;  %v1661_v39 = vadd.f32 %v4802_v20, %v1660_v37  ;;  %v1633_v24 = vadd.f32 %v4802_v20, %v4632_v51  ;;  %v1656_v42 = vadd.f32 %v4802_v20, %v4765_v47 }
 0x312   :  { %2618 = vmatpush.bf16.msra.mxu1 %v2358_v2  ;;  %v2096_v22 = vmax.f32 %v1646_v57, 0.0  ;;  %v2097_v7 = vmax.f32 %v1648_v15, 0.0  ;;  %v2375_v2 = vunpack.c.l.b16 %v2229_v38  ;;  %v2095_v53 = vmax.f32 %v1643_v14, 0.0  ;;  %v5088_v14 = vld [vmem:[#allocation52_spill] sm:$0xff] }
 0x313   :  { %v2275_v12 = vpack.c.bf16 %v2051_v26, %v2050_v16  ;;  %v1628_v18 = vadd.f32 %v4802_v20, %v4600_v13  ;;  %v2091_v51 = vmax.f32 %v1633_v24, 0.0  ;;  %v1806_v29 = vadd.f32 %v4802_v20, %v4679_v30 }
 0x314   :  { %v2298_v3 = vpack.c.bf16 %v2097_v7, %v2096_v22  ;;  %v2391_v5 = vpack.c.b16 %v2375_v2, %v2375_v2  ;;  %v1808_v47 = vadd.f32 %v4802_v20, %v4694_v49  ;;  %v2100_v54 = vmax.f32 %v1656_v42, 0.0  ;;  %v5089_v7 = vld [vmem:[#allocation54_spill] sm:$0xff] }
 0x315   :  { %2475 = vmatpush.bf16.msra.mxu2 %v4673_v31  ;;  %2491 = vmatpush.bf16.msra.mxu3 %v2275_v12  ;;  %v1641_v31 = vadd.f32 %v4802_v20, %v4669_v58  ;;  %v2102_v58 = vmax.f32 %v1661_v39, 0.0  ;;  %v1621_v41 = vadd.f32 %v4802_v20, %v4560_v1  ;;  %v1623_v50 = vadd.f32 %v4802_v20, %v4575_v10  ;;  %v5084_v10 = vld [vmem:[#allocation64_spill] sm:$0xff]  ;;  %v5090_v39 = vld [vmem:[#allocation70_spill] sm:$0xff] }
 0x316   :  { %2619 = vmatpush.bf16.msra.mxu1 %v2357_v28  ;;  %v1658_v28 = vadd.f32 %v4802_v20, %v4780_v61  ;;  %v1651_v61 = vadd.f32 %v4802_v20, %v4738_v48  ;;  %v2089_v23 = vmax.f32 %v1628_v18, 0.0  ;;  %v2160_v49 = vmax.f32 %v1806_v29, 0.0 }
 0x317   :  { %v2094_v63 = vmax.f32 %v1641_v31, 0.0  ;;  %v2161_v9 = vmax.f32 %v1808_v47, 0.0  ;;  %v1803_v1 = vadd.f32 %v4802_v20, %v4667_v52  ;;  %v1618_v59 = vadd.f32 %v4802_v20, %v5085_v0  ;;  %v5096_v47 = vld [vmem:[#allocation74_spill] sm:$0xff] }
 0x318   :  { %2492 = vmatmul.bf16.vlgmr.msra.gmra.mxu3 %v2392_v36  ;;  %v2101_v13 = vmax.f32 %v1658_v28, 0.0  ;;  %v2098_v33 = vmax.f32 %v1651_v61, 0.0  ;;  %v2086_v21 = vmax.f32 %v1621_v41, 0.0  ;;  %v2087_v37 = vmax.f32 %v1623_v50, 0.0  ;;  %v5086_v36 = vld [vmem:[#allocation72_spill] sm:$0xff] }
 0x319   :  { %2523 = vmatpush.bf16.msrb.mxu3 %v5078_v62  ;;  %2476 = vmatpush.bf16.msra.mxu2 %v4646_v55  ;;  %v1663_v55 = vadd.f32 %v4802_v20, %v1662_v35  ;;  %v2297_v6 = vpack.c.bf16 %v2095_v53, %v2094_v63  ;;  %v2330_v26 = vpack.c.bf16 %v2161_v9, %v2160_v49  ;;  %v5087_v62 = vld [vmem:[#allocation73_spill] sm:$0xff]  ;;  %v2159_v15 = vmax.f32 %v1803_v1, 0.0  ;;  %v5091_v63 = vld [vmem:[#allocation71_spill] sm:$0xff] }
 0x31a   :  { %2620 = vmatpush.bf16.msra.mxu1 %v2356_v46  ;;  %v2300_v16 = vpack.c.bf16 %v2101_v13, %v2100_v54  ;;  %v5083_v46 = vld [vmem:[#allocation75_spill] sm:$0xff]  ;;  %v1798_v52 = vadd.f32 %v4802_v20, %v5087_v62  ;;  %v2085_v35 = vmax.f32 %v1618_v59, 0.0  ;;  %v1766_v22 = vadd.f32 %v4802_v20, %v5088_v14  ;;  %v5098_v13 = vld [vmem:[#allocation44_spill] sm:$0xff] }
 0x31b   :  { %v2103_v60 = vmax.f32 %v1663_v55, 0.0  ;;  %v2379_v38 = vunpack.c.l.b16 %v5083_v46  ;;  %v1768_v2 = vadd.f32 %v4802_v20, %v5089_v7  ;;  %v2293_v55 = vpack.c.bf16 %v2087_v37, %v2086_v21  ;;  %v5099_v49 = vld [vmem:[#allocation63_spill] sm:$0xff]  ;;  %v5101_v46 = vld [vmem:[#allocation65_spill] sm:$0xff] }
 0x31c   :  { %v1793_v53 = vadd.f32 %v4802_v20, %v5091_v63  ;;  %v2144_v42 = vmax.f32 %v1766_v22, 0.0  ;;  %v2378_v61 = vunpack.c.h.b16 %v5096_v47  ;;  %v1758_v41 = vadd.f32 %v4802_v20, %v5098_v13  ;;  %v5108_v22 = vld [vmem:[#allocation57_spill] sm:$0xff]  ;;  %v5114_v13 = vld [vmem:[#allocation48_spill] sm:$0xff] }
 0x31d   :  { %2524 = vmatpush.bf16.msrb.mxu3 %v5079_v11  ;;  %2477 = vmatpush.bf16.msra.mxu2 %v4630_v19  ;;  %v1631_v19 = vadd.f32 %v4802_v20, %v4619_v32  ;;  %v2301_v25 = vpack.c.bf16 %v2103_v60, %v2102_v58  ;;  %v5082_v32 = vld [vmem:[#allocation9_spill] sm:$0xff]  ;;  %v2395_v11 = vpack.c.b16 %v2379_v38, %v2379_v38  ;;  %v2145_v28 = vmax.f32 %v1768_v2, 0.0  ;;  %v5102_v38 = vld [vmem:[#allocation38_spill] sm:$0xff]  ;;  %v5109_v2 = vld [vmem:[#allocation59_spill] sm:$0xff] }
 0x31e   :  { %2621 = vmatpush.bf16.msra.mxu1 %v2355_v40  ;;  %v1781_v9 = vadd.f32 %v4802_v20, %v5099_v49  ;;  %v2394_v1 = vpack.c.b16 %v2378_v61, %v2378_v61  ;;  %v2141_v21 = vmax.f32 %v1758_v41, 0.0  ;;  %v1771_v7 = vadd.f32 %v4802_v20, %v5108_v22 }
 0x31f   :  { %v2090_v4 = vmax.f32 %v1631_v19, 0.0  ;;  %v5093_v19 = vld [vmem:[#allocation49_spill] sm:$0xff]  ;;  %v1916_v41 = vadd.f32 %v4802_v20, %v5114_v13 }
 0x320   :  { %v1763_v24 = vadd.f32 %v4802_v20, %v5093_v19 }
 0x321   :  { %2525 = vmatpush.bf16.msrb.mxu3 %v5080_v27  ;;  %2478 = vmatpush.bf16.msra.mxu2 %v4598_v56  ;;  %v1626_v56 = vadd.f32 %v4802_v20, %v4590_v43  ;;  %v1653_v43 = vadd.f32 %v4802_v20, %v4750_v45  ;;  %v2295_v44 = vpack.c.bf16 %v2091_v51, %v2090_v4  ;;  %v2155_v51 = vmax.f32 %v1793_v53, 0.0 }
 0x322   :  { %v1801_v45 = vadd.f32 %v4802_v20, %v4650_v8  ;;  %v1796_v8 = vadd.f32 %v4802_v20, %v5086_v36  ;;  %v1791_v27 = vadd.f32 %v4802_v20, %v5090_v39  ;;  %v5105_v36 = vld [vmem:[#allocation62_spill] sm:$0xff]  ;;  %v1773_v39 = vadd.f32 %v4802_v20, %v5109_v2  ;;  %v5125_v2 = vld [vmem:[#allocation51_spill] sm:$0xff] }
 0x323   :  { %v2088_v30 = vmax.f32 %v1626_v56, 0.0  ;;  %v2099_v48 = vmax.f32 %v1653_v43, 0.0  ;;  %v5094_v56 = vld [vmem:[#allocation68_spill] sm:$0xff]  ;;  %v5097_v43 = vld [vmem:[#allocation42_spill] sm:$0xff] }
 0x324   :  { %2479 = vmatmul.bf16.vlgmr.msra.gmra.mxu2 %v2391_v5  ;;  %v2158_v57 = vmax.f32 %v1801_v45, 0.0  ;;  %v2157_v5 = vmax.f32 %v1798_v52, 0.0  ;;  %v1786_v18 = vadd.f32 %v4802_v20, %v5094_v56  ;;  %v2154_v4 = vmax.f32 %v1791_v27, 0.0 }
 0x325   :  { %2510 = vmatpush.bf16.msrb.mxu2 %v2298_v3  ;;  %2526 = vmatpush.bf16.msrb.mxu3 %v5081_v17  ;;  %v2299_v12 = vpack.c.bf16 %v2099_v48, %v2098_v33  ;;  %v2294_v40 = vpack.c.bf16 %v2089_v23, %v2088_v30  ;;  %v2156_v3 = vmax.f32 %v1796_v8, 0.0  ;;  %v5092_v17 = vld [vmem:[#allocation47_spill] sm:$0xff]  ;;  %v1756_v54 = vadd.f32 %v4802_v20, %v5097_v43  ;;  %v5100_v33 = vld [vmem:[#allocation66_spill] sm:$0xff] }
 0x326   :  { %v2329_v58 = vpack.c.bf16 %v2159_v15, %v2158_v57  ;;  %v1761_v60 = vadd.f32 %v4802_v20, %v5092_v17  ;;  %v2143_v30 = vmax.f32 %v1763_v24, 0.0  ;;  %v2322_v23 = vpack.c.bf16 %v2145_v28, %v2144_v42  ;;  %v5106_v57 = vld [vmem:[#allocation34_spill] sm:$0xff] }
 0x327   :  { %v2328_v29 = vpack.c.bf16 %v2157_v5, %v2156_v3  ;;  %v1783_v48 = vadd.f32 %v4802_v20, %v5100_v33  ;;  %v2327_v45 = vpack.c.bf16 %v2155_v51, %v2154_v4  ;;  %v2140_v59 = vmax.f32 %v1756_v54, 0.0  ;;  %v2232_v51 = vld [vmem:[%s4997_s1 + $0x28] sm:$0xff] }
 0x328   :  { %v2142_v50 = vmax.f32 %v1761_v60, 0.0  ;;  %v1778_v8 = vadd.f32 %v4802_v20, %v5105_v36  ;;  %v1746_v15 = vadd.f32 %v4802_v20, %v5106_v57  ;;  %v5111_v60 = vld [vmem:[#allocation60_spill] sm:$0xff]  ;;  %v2146_v56 = vmax.f32 %v1771_v7, 0.0  ;;  %v5123_v57 = vld [vmem:[#allocation39_spill] sm:$0xff] }
 0x329   :  { %2511 = vmatpush.bf16.msrb.mxu2 %v2297_v6  ;;  %2527 = vmatpush.bf16.msrb.mxu3 %v5082_v32  ;;  %v2151_v62 = vmax.f32 %v1783_v48, 0.0  ;;  %v2320_v27 = vpack.c.bf16 %v2141_v21, %v2140_v59  ;;  %v1928_v19 = vadd.f32 %v4802_v20, %v5111_v60  ;;  %v2382_v54 = vunpack.c.h.b16 %v2232_v51 }
 0x32a   :  { %v2149_v53 = vmax.f32 %v1778_v8, 0.0  ;;  %v2204_v59 = vmax.f32 %v1916_v41, 0.0  ;;  %v5122_v8 = vld [vmem:[#allocation27_spill] sm:$0xff]  ;;  %v2381_v7 = vunpack.c.l.b16 %v2232_v51  ;;  %v5131_v51 = vld [vmem:[#allocation22_spill] sm:$0xff]  ;;  %v5133_v41 = vld [vmem:[#allocation32_spill] sm:$0xff] }
 0x32b   :  { %v2209_v43 = vmax.f32 %v1928_v19, 0.0  ;;  %v5129_v19 = vld [vmem:[#allocation37_spill] sm:$0xff] }
 0x32d   :  { %2512 = vmatpush.bf16.msrb.mxu2 %v4659_v34  ;;  %2528 = vmatpush.bf16.msrb.mxu3 %v2301_v25  ;;  %v1616_v34 = vadd.f32 %v4802_v20, %v5084_v10  ;;  %v5095_v25 = vld [vmem:[#allocation69_spill] sm:$0xff]  ;;  %v1751_v10 = vadd.f32 %v4802_v20, %v5102_v38  ;;  %v5118_v38 = vld [vmem:[#allocation43_spill] sm:$0xff] }
 0x32e   :  { %v1788_v32 = vadd.f32 %v4802_v20, %v5095_v25  ;;  %v5112_v25 = vld [vmem:[#allocation53_spill] sm:$0xff] }
 0x32f   :  { %v2084_v31 = vmax.f32 %v1616_v34, 0.0  ;;  %v5103_v34 = vld [vmem:[#allocation40_spill] sm:$0xff] }
 0x330   :  { %v1753_v0 = vadd.f32 %v4802_v20, %v5103_v34  ;;  %v5119_v34 = vld [vmem:[#allocation45_spill] sm:$0xff] }
 0x331   :  { %2513 = vmatpush.bf16.msrb.mxu2 %v2295_v44  ;;  %2529 = vmatpush.bf16.msrb.mxu3 %v2300_v16  ;;  %v2292_v6 = vpack.c.bf16 %v2085_v35, %v2084_v31  ;;  %v2152_v16 = vmax.f32 %v1786_v18, 0.0  ;;  %v2153_v44 = vmax.f32 %v1788_v32, 0.0  ;;  %v2138_v35 = vmax.f32 %v1751_v10, 0.0 }
 0x332   :  { %v2139_v14 = vmax.f32 %v1753_v0, 0.0  ;;  %v2147_v18 = vmax.f32 %v1773_v39, 0.0  ;;  %v1921_v32 = vadd.f32 %v4802_v20, %v5112_v25  ;;  %v1911_v10 = vadd.f32 %v4802_v20, %v5118_v38  ;;  %v5126_v39 = vld [vmem:[#allocation24_spill] sm:$0xff] }
 0x333   :  { %v2326_v52 = vpack.c.bf16 %v2153_v44, %v2152_v16  ;;  %v2398_v16 = vpack.c.b16 %v2382_v54, %v2382_v54  ;;  %v5116_v44 = vld [vmem:[#allocation28_spill] sm:$0xff]  ;;  %v1913_v0 = vadd.f32 %v4802_v20, %v5119_v34 }
 0x334   :  { %v2319_v28 = vpack.c.bf16 %v2139_v14, %v2138_v35  ;;  %v2323_v49 = vpack.c.bf16 %v2147_v18, %v2146_v56  ;;  %v2202_v35 = vmax.f32 %v1911_v10, 0.0  ;;  %v2397_v18 = vpack.c.b16 %v2381_v7, %v2381_v7  ;;  %v5137_v10 = vld [vmem:[#allocation30_spill] sm:$0xff]  ;;  %v5141_v7 = vld [vmem:[#allocation13_spill] sm:$0xff] }
 0x335   :  { %2514 = vmatpush.bf16.msrb.mxu2 %v2294_v40  ;;  %2530 = vmatpush.bf16.msrb.mxu3 %v2299_v12  ;;  %v2321_v12 = vpack.c.bf16 %v2143_v30, %v2142_v50  ;;  %v2150_v40 = vmax.f32 %v1781_v9, 0.0  ;;  %v5115_v50 = vld [vmem:[#allocation50_spill] sm:$0xff]  ;;  %v2206_v9 = vmax.f32 %v1921_v32, 0.0  ;;  %v2203_v14 = vmax.f32 %v1913_v0, 0.0 }
 0x336   :  { %v1918_v30 = vadd.f32 %v4802_v20, %v5115_v50  ;;  %v5130_v32 = vld [vmem:[#allocation46_spill] sm:$0xff]  ;;  %v1896_v50 = vadd.f32 %v4802_v20, %v5133_v41  ;;  %v1891_v34 = vadd.f32 %v4802_v20, %v5137_v10 }
 0x337   :  { %v2325_v3 = vpack.c.bf16 %v2151_v62, %v2150_v40  ;;  %v1883_v40 = vadd.f32 %v4802_v20, %v5122_v8  ;;  %v2351_v56 = vpack.c.bf16 %v2203_v14, %v2202_v35  ;;  %v5139_v8 = vld [vmem:[#allocation16_spill] sm:$0xff] }
 0x338   :  { %2531 = vmatmul.bf16.vlgmr.msrb.gmra.mxu3 %v2395_v11  ;;  %v5107_v11 = vld [vmem:[#allocation36_spill] sm:$0xff]  ;;  %v2205_v21 = vmax.f32 %v1918_v30, 0.0 }
 0x339   :  { %2562 = vmatpush.bf16.msra.mxu3 %v2330_v26  ;;  %2515 = vmatpush.bf16.msrb.mxu2 %v2293_v55  ;;  %v5104_v26 = vld [vmem:[#allocation61_spill] sm:$0xff]  ;;  %v1748_v31 = vadd.f32 %v4802_v20, %v5107_v11  ;;  %v4904_v55 = vld [vmem:[%s4997_s1 + $0x30] sm:$0xff] }
 0x33a   :  { %v1776_v37 = vadd.f32 %v4802_v20, %v5104_v26  ;;  %v2383_v5 = vunpack.c.l.b16 %v4904_v55  ;;  %v5124_v11 = vld [vmem:[#allocation41_spill] sm:$0xff]  ;;  %v2352_v22 = vpack.c.bf16 %v2205_v21, %v2204_v59  ;;  %v5138_v59 = vld [vmem:[#allocation31_spill] sm:$0xff] }
 0x33b   :  { %v2137_v42 = vmax.f32 %v1748_v31, 0.0  ;;  %v1908_v31 = vadd.f32 %v4802_v20, %v5124_v11  ;;  %v1893_v21 = vadd.f32 %v4802_v20, %v5138_v59  ;;  %v2194_v11 = vmax.f32 %v1891_v34, 0.0 }
 0x33c   :  { %v2148_v63 = vmax.f32 %v1776_v37, 0.0  ;;  %v2399_v24 = vpack.c.b16 %v2383_v5, %v2383_v5  ;;  %v5120_v37 = vld [vmem:[#allocation56_spill] sm:$0xff]  ;;  %v2191_v5 = vmax.f32 %v1883_v40, 0.0  ;;  %v1861_v40 = vadd.f32 %v4802_v20, %v5139_v8 }
 0x33d   :  { %2563 = vmatpush.bf16.msra.mxu3 %v2329_v58  ;;  %2516 = vmatpush.bf16.msrb.mxu2 %v2292_v6  ;;  %v5110_v58 = vld [vmem:[#allocation58_spill] sm:$0xff]  ;;  %v2136_v6 = vmax.f32 %v1746_v15, 0.0  ;;  %v1906_v15 = vadd.f32 %v4802_v20, %v5123_v57 }
 0x33e   :  { %v1926_v17 = vadd.f32 %v4802_v20, %v5110_v58  ;;  %v2324_v4 = vpack.c.bf16 %v2149_v53, %v2148_v63  ;;  %2583 = vmatmul.bf16.vlgmr.msrb.gmra.mxu1 %v2399_v24  ;;  %v5127_v63 = vld [vmem:[#allocation25_spill] sm:$0xff]  ;;  %v1903_v24 = vadd.f32 %v4802_v20, %v5129_v19  ;;  %v5143_v19 = vld [vmem:[#allocation10_spill] sm:$0xff] }
 0x33f   :  { %v1878_v53 = vadd.f32 %v4802_v20, %v5127_v63  ;;  %v2182_v63 = vmax.f32 %v1861_v40, 0.0  ;;  %v3502_v40 = vmov 0.0  }
 0x340   :  { %v2208_v61 = vmax.f32 %v1926_v17, 0.0  ;;  %v5128_v17 = vld [vmem:[#allocation35_spill] sm:$0xff]  ;;  %30 = vst.msk [vmem:[#allocation2] sm:$0xff] %vm29_vm2, %v3502_v40 }
 0x341   :  { %2564 = vmatpush.bf16.msra.mxu3 %v2328_v29  ;;  %2517 = vmatpush.bf16.msrb.mxu2 %v5101_v46  ;;  %v5113_v29 = vld [vmem:[#allocation55_spill] sm:$0xff]  ;;  %v1901_v60 = vadd.f32 %v4802_v20, %v5128_v17  ;;  %v2189_v13 = vmax.f32 %v1878_v53, 0.0 }
 0x342   :  { %v1923_v47 = vadd.f32 %v4802_v20, %v5113_v29  ;;  %v2354_v48 = vpack.c.bf16 %v2209_v43, %v2208_v61  ;;  %v1871_v29 = vadd.f32 %v4802_v20, %v5131_v51 }
 0x344   :  { %2518 = vmatmul.bf16.vlgmr.msrb.gmra.mxu2 %v2394_v1  ;;  %v2207_v33 = vmax.f32 %v1923_v47, 0.0  ;;  %v5117_v1 = vld [vmem:[#allocation29_spill] sm:$0xff]  ;;  %v5132_v47 = vld [vmem:[#allocation23_spill] sm:$0xff] }
 0x345   :  { %2549 = vmatpush.bf16.msra.mxu2 %v2322_v23  ;;  %2565 = vmatpush.bf16.msra.mxu3 %v2327_v45  ;;  %v2318_v23 = vpack.c.bf16 %v2137_v42, %v2136_v6  ;;  %v1886_v45 = vadd.f32 %v4802_v20, %v5116_v44  ;;  %v1888_v46 = vadd.f32 %v4802_v20, %v5117_v1  ;;  %v2200_v6 = vmax.f32 %v1906_v15, 0.0  ;;  %v2234_v42 = vld [vmem:[%s4997_s1 + $0x38] sm:$0xff] }
 0x346   :  { %v2353_v26 = vpack.c.bf16 %v2207_v33, %v2206_v9  ;;  %v2386_v25 = vunpack.c.h.b16 %v2234_v42  ;;  %v1873_v61 = vadd.f32 %v4802_v20, %v5132_v47  ;;  %v2198_v9 = vmax.f32 %v1901_v60, 0.0 }
 0x347   :  { %v2192_v62 = vmax.f32 %v1886_v45, 0.0  ;;  %v2199_v33 = vmax.f32 %v1903_v24, 0.0  ;;  %v5136_v45 = vld [vmem:[#allocation21_spill] sm:$0xff]  ;;  %v1851_v24 = vadd.f32 %v4802_v20, %v5143_v19 }
 0x348   :  { %v2402_v43 = vpack.c.b16 %v2386_v25, %v2386_v25  ;;  %v1868_v1 = vadd.f32 %v4802_v20, %v5136_v45  ;;  %v2187_v38 = vmax.f32 %v1873_v61, 0.0 }
 0x349   :  { %2550 = vmatpush.bf16.msra.mxu2 %v2321_v12  ;;  %2566 = vmatpush.bf16.msra.mxu3 %v2326_v52  ;;  %v5121_v12 = vld [vmem:[#allocation26_spill] sm:$0xff]  ;;  %v2193_v52 = vmax.f32 %v1888_v46, 0.0  ;;  %v2186_v46 = vmax.f32 %v1871_v29, 0.0  ;;  %v2178_v47 = vmax.f32 %v1851_v24, 0.0 }
 0x34a   :  { %v1881_v36 = vadd.f32 %v4802_v20, %v5121_v12  ;;  %v2349_v12 = vpack.c.bf16 %v2199_v33, %v2198_v9  ;;  %v2185_v15 = vmax.f32 %v1868_v1, 0.0 }
 0x34b   :  { %v2346_v58 = vpack.c.bf16 %v2193_v52, %v2192_v62  ;;  %v5140_v62 = vld [vmem:[#allocation17_spill] sm:$0xff]  ;;  %v2343_v35 = vpack.c.bf16 %v2187_v38, %v2186_v46 }
 0x34c   :  { %v1863_v52 = vadd.f32 %v4802_v20, %v5140_v62 }
 0x34d   :  { %2551 = vmatpush.bf16.msra.mxu2 %v2320_v27  ;;  %2567 = vmatpush.bf16.msra.mxu3 %v2325_v3  ;;  %v1876_v27 = vadd.f32 %v4802_v20, %v5126_v39  ;;  %v2190_v3 = vmax.f32 %v1881_v36, 0.0  ;;  %v5142_v39 = vld [vmem:[#allocation14_spill] sm:$0xff] }
 0x34e   :  { %2622 = vmatmul.bf16.vlgmr.msra.gmra.mxu1 %v2402_v43  ;;  %v2183_v53 = vmax.f32 %v1863_v52, 0.0 }
 0x34f   :  { %v2188_v54 = vmax.f32 %v1876_v27, 0.0  ;;  %v2345_v30 = vpack.c.bf16 %v2191_v5, %v2190_v3  ;;  %v1858_v27 = vadd.f32 %v4802_v20, %v5142_v39 }
 0x350   :  { %v2341_v25 = vpack.c.bf16 %v2183_v53, %v2182_v63  ;;  %v2226_v63 = vld [vmem:[#allocation2] sm:$0xff] }
 0x351   :  { %2552 = vmatpush.bf16.msra.mxu2 %v2319_v28  ;;  %2568 = vmatpush.bf16.msra.mxu3 %v2324_v4  ;;  %v2201_v28 = vmax.f32 %v1908_v31, 0.0  ;;  %v2428_v4 = vpop.f32.mrf.mxu1  ;;  %v2344_v0 = vpack.c.bf16 %v2189_v13, %v2188_v54  ;;  %v2195_v31 = vmax.f32 %v1893_v21, 0.0  ;;  %v2384_v54 = vunpack.c.h.b16 %v4904_v55 }
 0x353   :  { %v2347_v5 = vpack.c.bf16 %v2195_v31, %v2194_v11  ;;  %v3465_v11 = vld [vmem:[%s5000_s4] sm:$0xff] }
 0x355   :  { %2553 = vmatpush.bf16.msra.mxu2 %v2318_v23  ;;  %2569 = vmatpush.bf16.msra.mxu3 %v2323_v49  ;;  %v5134_v23 = vld [vmem:[#allocation33_spill] sm:$0xff] }
 0x356   :  { %v1898_v49 = vadd.f32 %v4802_v20, %v5134_v23 }
 0x358   :  { %2570 = vmatmul.bf16.vlgmr.msra.gmra.mxu3 %v2398_v16  ;;  %v5135_v16 = vld [vmem:[#allocation19_spill] sm:$0xff] }
 0x359   :  { %2601 = vmatpush.bf16.msrb.mxu3 %v2354_v48  ;;  %2554 = vmatpush.bf16.msra.mxu2 %v5120_v37  ;;  %v2350_v48 = vpack.c.bf16 %v2201_v28, %v2200_v6  ;;  %v1866_v44 = vadd.f32 %v4802_v20, %v5135_v16  ;;  %v2197_v37 = vmax.f32 %v1898_v49, 0.0  ;;  %v2430_v36 = vpop.f32.mrf.mxu1 }
 0x35b   :  { %v2184_v57 = vmax.f32 %v1866_v44, 0.0 }
 0x35d   :  { %2602 = vmatpush.bf16.msrb.mxu3 %v2353_v26  ;;  %2555 = vmatpush.bf16.msra.mxu2 %v5125_v2  ;;  %v2196_v26 = vmax.f32 %v1896_v50, 0.0  ;;  %v1856_v2 = vadd.f32 %v4802_v20, %v5141_v7  ;;  %v2342_v3 = vpack.c.bf16 %v2185_v15, %v2184_v57  ;;  %v3466_v57 = vld [vmem:[%s5000_s4 + $0x8] sm:$0xff] }
 0x35f   :  { %v2348_v14 = vpack.c.bf16 %v2197_v37, %v2196_v26 }
 0x361   :  { %2603 = vmatpush.bf16.msrb.mxu3 %v2352_v22  ;;  %2556 = vmatpush.bf16.msra.mxu2 %v5130_v32  ;;  %v2385_v22 = vunpack.c.l.b16 %v2234_v42  ;;  %v2467_v17 = vpop.f32.mrf.mxu1  ;;  %v5144_v42 = vld [vmem:[#allocation11_spill] sm:$0xff] }
 0x362   :  { %v1853_v28 = vadd.f32 %v4802_v20, %v5144_v42 }
 0x364   :  { %2557 = vmatmul.bf16.vlgmr.msra.gmra.mxu2 %v2397_v18  ;;  %v2181_v18 = vmax.f32 %v1858_v27, 0.0  ;;  %v2179_v61 = vmax.f32 %v1853_v28, 0.0 }
 0x365   :  { %2588 = vmatpush.bf16.msrb.mxu2 %v2346_v58  ;;  %2604 = vmatpush.bf16.msrb.mxu3 %v2351_v56  ;;  %v2401_v58 = vpack.c.b16 %v2385_v22, %v2385_v22  ;;  %v2180_v56 = vmax.f32 %v1856_v2, 0.0  ;;  %v2454_v32 = vpop.f32.mrf.mxu3 }
 0x367   :  { %v2340_v43 = vpack.c.bf16 %v2181_v18, %v2180_v56 }
 0x369   :  { %2589 = vmatpush.bf16.msrb.mxu2 %v2345_v30  ;;  %2605 = vmatpush.bf16.msrb.mxu3 %v2350_v48  ;;  %v2469_v13 = vpop.f32.mrf.mxu1  ;;  %v2400_v30 = vpack.c.b16 %v2384_v54, %v2384_v54 }
 0x36b   :  { %v2441_v60 = vpop.f32.mrf.mxu2 }
 0x36c   :  { %v2442_v6 = vadd.f32 %v2441_v60, %v2428_v4  ;;  %v2339_v4 = vpack.c.bf16 %v2179_v61, %v2178_v47  ;;  %v3473_v60 = vld [vmem:[%s5001_s5] ss:$0 sm:$0xff] }
 0x36d   :  { %2590 = vmatpush.bf16.msrb.mxu2 %v2344_v0  ;;  %2606 = vmatpush.bf16.msrb.mxu3 %v2349_v12  ;;  %v2456_v50 = vpop.f32.mrf.mxu3 }
 0x36e   :  { %v2455_v51 = vadd.f32 %v2454_v32, %v2442_v6 }
 0x370   :  { %v2468_v29 = vadd.f32 %v2467_v17, %v2455_v51 }
 0x371   :  { %2591 = vmatpush.bf16.msrb.mxu2 %v2343_v35  ;;  %2607 = vmatpush.bf16.msrb.mxu3 %v2348_v14  ;;  %v2506_v20 = vpop.f32.mrf.mxu1 }
 0x373   :  { %v2443_v41 = vpop.f32.mrf.mxu2 }
 0x375   :  { %2592 = vmatpush.bf16.msrb.mxu2 %v2342_v3  ;;  %2608 = vmatpush.bf16.msrb.mxu3 %v2347_v5 }
 0x378   :  { %2609 = vmatmul.bf16.vlgmr.msrb.gmra.mxu3 %v2401_v58 }
 0x379   :  { %2593 = vmatpush.bf16.msrb.mxu2 %v2341_v25  ;;  %v2508_v23 = vpop.f32.mrf.mxu1 }
 0x37d   :  { %2594 = vmatpush.bf16.msrb.mxu2 %v2340_v43 }
 0x381   :  { %2595 = vmatpush.bf16.msrb.mxu2 %v2339_v4  ;;  %v2545_v48 = vpop.f32.mrf.mxu1 }
 0x384   :  { %2596 = vmatmul.bf16.vlgmr.msrb.gmra.mxu2 %v2400_v30 }
 0x385   :  { %2664 = vmatpush.bf16.msra.mxu2 %v3466_v57 }
 0x389   :  { %v2547_v46 = vpop.f32.mrf.mxu1  ;;  %2665 = vmatpush.bf16.msra.mxu2 %v3465_v11 }
 0x39b   :  { %v2493_v49 = vpop.f32.mrf.mxu3 }
 0x3a3   :  { %v2495_v9 = vpop.f32.mrf.mxu3 }
 0x3a7   :  { %v2480_v33 = vpop.f32.mrf.mxu2 }
 0x3a8   :  { %v2481_v16 = vadd.f32 %v2480_v33, %v2468_v29 }
 0x3aa   :  { %v2494_v44 = vadd.f32 %v2493_v49, %v2481_v16 }
 0x3ac   :  { %v2507_v45 = vadd.f32 %v2506_v20, %v2494_v44 }
 0x3af   :  { %v2482_v1 = vpop.f32.mrf.mxu2 }
 0x3bb   :  { %v2532_v55 = vpop.f32.mrf.mxu3  ;;  %v2584_v0 = vpop.f32.mrf.mxu1 }
 0x3c3   :  { %v2534_v38 = vpop.f32.mrf.mxu3  ;;  %v2586_v37 = vpop.f32.mrf.mxu1 }
 0x3c7   :  { %v2519_v10 = vpop.f32.mrf.mxu2 }
 0x3c8   :  { %v2520_v34 = vadd.f32 %v2519_v10, %v2507_v45 }
 0x3ca   :  { %v2533_v59 = vadd.f32 %v2532_v55, %v2520_v34 }
 0x3cb   :  { %v2623_v36 = vpop.f32.mrf.mxu1 }
 0x3cc   :  { %v2546_v21 = vadd.f32 %v2545_v48, %v2533_v59 }
 0x3cf   :  { %v2521_v26 = vpop.f32.mrf.mxu2 }
 0x3d3   :  { %v2625_v52 = vpop.f32.mrf.mxu1 }
 0x3db   :  { %v2571_v12 = vpop.f32.mrf.mxu3 }
 0x3e3   :  { %v2573_v8 = vpop.f32.mrf.mxu3 }
 0x3e7   :  { %v2558_v62 = vpop.f32.mrf.mxu2 }
 0x3e8   :  { %v2559_v35 = vadd.f32 %v2558_v62, %v2546_v21 }
 0x3ea   :  { %v2572_v14 = vadd.f32 %v2571_v12, %v2559_v35 }
 0x3ec   :  { %v2585_v7 = vadd.f32 %v2584_v0, %v2572_v14 }
 0x3ef   :  { %v2560_v15 = vpop.f32.mrf.mxu2 }
 0x3fb   :  { %v2610_v31 = vpop.f32.mrf.mxu3 }
 0x403   :  { %v2612_v22 = vpop.f32.mrf.mxu3 }
 0x407   :  { %v2597_v2 = vpop.f32.mrf.mxu2 }
 0x408   :  { %v2598_v39 = vadd.f32 %v2597_v2, %v2585_v7 }
 0x40a   :  { %v2611_v27 = vadd.f32 %v2610_v31, %v2598_v39 }
 0x40c   :  { %v2624_v53 = vadd.f32 %v2623_v36, %v2611_v27 }
 0x40e   :  { %v2627_v3 = vadd.f32 %v2624_v53, %v2226_v63 }
 0x40f   :  { %v2599_v5 = vpop.f32.mrf.mxu2 }
 0x410   :  { %2629 = vst.msk [vmem:[#allocation2] sm:$0xff] %vm29_vm2, %v2627_v3 }
 0x417   :  { %v2633_v58 = vld [vmem:[#allocation2] sm:$0xff] }
 0x418   :  { %v2634_v17 = vpack.c.bf16 %v2633_v58, %v2633_v58 }
 0x41a   :  { %3336 = vmatmul.msk.bf16.vlgmr.msra.gmra.mxu2 %vm29_vm2, %v2634_v17 }
 0x49d   :  { %v2667_v19 = vpop.f32.mrf.mxu2 }
 0x49e   :  { %v2668_v24 = vadd.f32 %v3473_v60, %v2667_v19 }
 0x4a0   :  { %2671 = vst [vmem:[#allocation3] sm:$0xff] %v2668_v24 }
 0x4a1   :  { %2682 = dma.vmem_to_hbm [thread:$0]  %s2678_s28, 128, %s2680_s7, [#allocation4]  }
 0x4a5   :  { %v2669_v6 = vpop.f32.mrf.mxu2 }
 0x4a6   :  { %3500 = dma.done.wait [#allocation4], 128  }
 0x4a7   :  { %3501 = vsyncadd [#allocation4], 4294967168 }
 0x4a8   :  { %2687 = vsyncpa [#allocation4], 1 }

</bundles_post_ra>
